<compile_context>
chip_gen: v5e
topology: v5e:2x2
jax: 0.10.0
libtpu: 0.0.40
codegen_flags: <defaults>
</compile_context>

<pallas_src>
import jax
import jax.numpy as jnp
from jax.experimental import pallas as pl
from jax.experimental.pallas import tpu as pltpu

# ---------------- small, tile-friendly config ----------------
IN_DIM = 256        # SimpleMLP in_dim  (2 * d_tok in the UNITER usage)
OUT_DIM = 128       # SimpleMLP out_dim (d_tok)
DIM_FF = 2048       # SimpleMLP dim_feedforward (default)
LN_EPS = 1e-5
TM = 8              # rows per grid step (sublane-aligned); grid axis is "parallel"


# ---------------- fused Pallas kernel ----------------
def _simple_mlp_kernel(x_ref, nw_ref, nb_ref, w1_ref, b1_ref, w2_ref, b2_ref, o_ref):
    """LayerNorm -> Linear1 -> ReLU -> (dropout=identity) -> Linear2, fused, one row-block."""
    x = x_ref[...]                                              # (TM, IN_DIM) f32

    # LayerNorm in f32 (VPU + EUP rsqrt).
    mu = jnp.mean(x, axis=-1, keepdims=True)
    var = jnp.mean((x - mu) ** 2, axis=-1, keepdims=True)
    xn = (x - mu) * jax.lax.rsqrt(var + LN_EPS) * nw_ref[...] + nb_ref[...]

    # Linear1 + ReLU: bf16 operands on the MXU, f32 accumulate, f32 elementwise.
    h = jnp.dot(xn.astype(jnp.bfloat16), w1_ref[...],
                preferred_element_type=jnp.float32) + b1_ref[...]
    h = jnp.maximum(h, 0.0)

    # dropout / dropout2 are identity in eval mode (no RNG drawn).
    y = jnp.dot(h.astype(jnp.bfloat16), w2_ref[...],
                preferred_element_type=jnp.float32) + b2_ref[...]
    o_ref[...] = y.astype(o_ref.dtype)


def simple_mlp_pallas(x, params, *, tm=TM):
    """x: (..., IN_DIM) float32 -> (..., OUT_DIM) float32."""
    orig_shape = x.shape
    in_dim = orig_shape[-1]
    out_dim = params["w2"].shape[1]

    x2 = x.reshape(-1, in_dim).astype(jnp.float32)
    m = x2.shape[0]
    m_pad = tm * pl.cdiv(m, tm)
    if m_pad != m:
        x2 = jnp.pad(x2, ((0, m_pad - m), (0, 0)))

    # Matmul weights in bf16 (no-op if already bf16); LN params & biases stay f32.
    weights = (params["nw"], params["nb"],
               params["w1"].astype(jnp.bfloat16), params["b1"],
               params["w2"].astype(jnp.bfloat16), params["b2"])

    in_specs = [pl.BlockSpec((tm, in_dim), lambda i: (i, 0))]
    # Weights/biases use constant index maps (whole array resident in VMEM).
    # TODO(synk): at real UNITER sizes on v7x, add pipeline_mode=pl.Buffered(1) for these
    #             constant-index weight specs to avoid pointless double-buffering.
    in_specs += [pl.BlockSpec(w.shape, lambda i: (0, 0)) for w in weights]

    out = pl.pallas_call(
        _simple_mlp_kernel,
        grid=(m_pad // tm,),
        in_specs=in_specs,
        out_specs=pl.BlockSpec((tm, out_dim), lambda i: (i, 0)),
        out_shape=jax.ShapeDtypeStruct((m_pad, out_dim), jnp.float32),
        compiler_params=pltpu.CompilerParams(dimension_semantics=("parallel",)),
    )(x2, *weights)

    out = out[:m]
    return out.reshape(orig_shape[:-1] + (out_dim,))


# ---------------- pure-JAX reference (f32) ----------------
def simple_mlp_ref(x, params):
    x = x.astype(jnp.float32)
    mu = jnp.mean(x, axis=-1, keepdims=True)
    var = jnp.mean((x - mu) ** 2, axis=-1, keepdims=True)
    xn = (x - mu) * jax.lax.rsqrt(var + LN_EPS) * params["nw"][0] + params["nb"][0]
    h = jnp.maximum(xn @ params["w1"].astype(jnp.float32) + params["b1"][0], 0.0)
    return h @ params["w2"].astype(jnp.float32) + params["b2"][0]


# ---------------- deterministic parameter init ----------------
def _normal(key, shape, scale=0.02):
    return scale * jax.random.normal(key, shape, jnp.float32)


def init_params(key):
    k1, k2, k3, k4 = jax.random.split(key, 4)
    return {
        "nw": jnp.ones((1, IN_DIM), jnp.float32),      # norm1.weight
        "nb": jnp.zeros((1, IN_DIM), jnp.float32),     # norm1.bias
        "w1": _normal(k1, (IN_DIM, DIM_FF)),           # linear1.weight (already transposed)
        "b1": _normal(k2, (1, DIM_FF)),                # linear1.bias
        "w2": _normal(k3, (DIM_FF, OUT_DIM)),          # linear2.weight (already transposed)
        "b2": _normal(k4, (1, OUT_DIM)),               # linear2.bias
    }


# ---------------- main ----------------
if __name__ == "__main__":
    key = jax.random.PRNGKey(0)
    kx, kp = jax.random.split(key)
    params = init_params(kp)

    B, S = 2, 8                                        # 16 rows -> 2 parallel row-blocks of 8
    x = jax.random.normal(kx, (B, S, IN_DIM), jnp.float32)

    fwd = jax.jit(simple_mlp_pallas)
    out = fwd(x, params)
    jax.block_until_ready(out)

    assert out.shape == (B, S, OUT_DIM)
    ref = simple_mlp_ref(x.reshape(-1, IN_DIM), params).reshape(B, S, OUT_DIM)
    max_err = float(jnp.max(jnp.abs(out - ref)))
    assert jnp.isfinite(out).all()
    assert max_err < 5e-2, f"max abs err {max_err}"    # loose bound: bf16 MXU operands, f32 accum

    print("KERNEL_OK")
</pallas_src>

<mosaic_0001>
module attributes {stable_mosaic.version = 11 : i64} {
  func.func @_simple_mlp_kernel(%arg0: i32, %arg1: memref<8x256xf32, #tpu.memory_space<vmem>>, %arg2: memref<1x256xf32, #tpu.memory_space<vmem>>, %arg3: memref<1x256xf32, #tpu.memory_space<vmem>>, %arg4: memref<256x2048xbf16, #tpu.memory_space<vmem>>, %arg5: memref<1x2048xf32, #tpu.memory_space<vmem>>, %arg6: memref<2048x128xbf16, #tpu.memory_space<vmem>>, %arg7: memref<1x128xf32, #tpu.memory_space<vmem>>, %arg8: memref<8x128xf32, #tpu.memory_space<vmem>>) attributes {dimension_semantics = [#tpu.dimension_semantics<parallel>], iteration_bounds = array<i64: 2>, scalar_prefetch = 0 : i64, scratch_operands = 0 : i64, tpu.core_type = #tpu.core_type<tc>, window_params = [{transform_indices = @transform_0, window_bounds = array<i64: 8, 256>}, {pipeline_mode = #tpu.pipeline_mode<synchronous>, transform_indices = @transform_1, window_bounds = array<i64: 1, 256>}, {pipeline_mode = #tpu.pipeline_mode<synchronous>, transform_indices = @transform_2, window_bounds = array<i64: 1, 256>}, {pipeline_mode = #tpu.pipeline_mode<synchronous>, transform_indices = @transform_3, window_bounds = array<i64: 256, 2048>}, {pipeline_mode = #tpu.pipeline_mode<synchronous>, transform_indices = @transform_4, window_bounds = array<i64: 1, 2048>}, {pipeline_mode = #tpu.pipeline_mode<synchronous>, transform_indices = @transform_5, window_bounds = array<i64: 2048, 128>}, {pipeline_mode = #tpu.pipeline_mode<synchronous>, transform_indices = @transform_6, window_bounds = array<i64: 1, 128>}, {transform_indices = @transform_7, window_bounds = array<i64: 8, 128>}]} {
    %c0 = arith.constant 0 : index
    %c0_0 = arith.constant 0 : index
    %0 = vector.load %arg1[%c0, %c0_0] : memref<8x256xf32, #tpu.memory_space<vmem>>, vector<8x256xf32>
    %cst = arith.constant dense<0.000000e+00> : vector<8xf32>
    %1 = vector.multi_reduction <add>, %0, %cst [1] : vector<8x256xf32> to vector<8xf32>
    %2 = vector.shape_cast %1 : vector<8xf32> to vector<8x1xf32>
    %cst_1 = arith.constant 2.560000e+02 : f32
    %3 = vector.broadcast %cst_1 : f32 to vector<8x1xf32>
    %4 = arith.divf %2, %3 : vector<8x1xf32>
    %5 = vector.broadcast %4 : vector<8x1xf32> to vector<8x256xf32>
    %6 = arith.subf %0, %5 : vector<8x256xf32>
    %7 = arith.mulf %6, %6 : vector<8x256xf32>
    %cst_2 = arith.constant dense<0.000000e+00> : vector<8xf32>
    %8 = vector.multi_reduction <add>, %7, %cst_2 [1] : vector<8x256xf32> to vector<8xf32>
    %9 = vector.shape_cast %8 : vector<8xf32> to vector<8x1xf32>
    %cst_3 = arith.constant 2.560000e+02 : f32
    %10 = vector.broadcast %cst_3 : f32 to vector<8x1xf32>
    %11 = arith.divf %9, %10 : vector<8x1xf32>
    %12 = vector.broadcast %4 : vector<8x1xf32> to vector<8x256xf32>
    %13 = arith.subf %0, %12 : vector<8x256xf32>
    %cst_4 = arith.constant 9.99999974E-6 : f32
    %14 = vector.broadcast %cst_4 : f32 to vector<8x1xf32>
    %15 = arith.addf %11, %14 : vector<8x1xf32>
    %16 = math.rsqrt %15 : vector<8x1xf32>
    %17 = vector.broadcast %16 : vector<8x1xf32> to vector<8x256xf32>
    %18 = arith.mulf %13, %17 : vector<8x256xf32>
    %c0_5 = arith.constant 0 : index
    %c0_6 = arith.constant 0 : index
    %19 = vector.load %arg2[%c0_5, %c0_6] : memref<1x256xf32, #tpu.memory_space<vmem>>, vector<1x256xf32>
    %20 = vector.broadcast %19 : vector<1x256xf32> to vector<8x256xf32>
    %21 = arith.mulf %18, %20 : vector<8x256xf32>
    %c0_7 = arith.constant 0 : index
    %c0_8 = arith.constant 0 : index
    %22 = vector.load %arg3[%c0_7, %c0_8] : memref<1x256xf32, #tpu.memory_space<vmem>>, vector<1x256xf32>
    %23 = vector.broadcast %22 : vector<1x256xf32> to vector<8x256xf32>
    %24 = arith.addf %21, %23 : vector<8x256xf32>
    %25 = arith.truncf %24 : vector<8x256xf32> to vector<8x256xbf16>
    %c0_9 = arith.constant 0 : index
    %c0_10 = arith.constant 0 : index
    %26 = vector.load %arg4[%c0_9, %c0_10] : memref<256x2048xbf16, #tpu.memory_space<vmem>>, vector<256x2048xbf16>
    %cst_11 = arith.constant dense<0.000000e+00> : vector<8x2048xf32>
    %27 = tpu.matmul %25, %26, %cst_11 {dimension_numbers = #tpu.dot_dimension_numbers<[1], [0], [0], [1], [0, 0, 1, 1], [], []>} : vector<8x256xbf16>, vector<256x2048xbf16>, vector<8x2048xf32> -> vector<8x2048xf32>
    %c0_12 = arith.constant 0 : index
    %c0_13 = arith.constant 0 : index
    %28 = vector.load %arg5[%c0_12, %c0_13] : memref<1x2048xf32, #tpu.memory_space<vmem>>, vector<1x2048xf32>
    %29 = vector.broadcast %28 : vector<1x2048xf32> to vector<8x2048xf32>
    %30 = arith.addf %27, %29 : vector<8x2048xf32>
    %cst_14 = arith.constant 0.000000e+00 : f32
    %31 = vector.broadcast %cst_14 : f32 to vector<8x2048xf32>
    %32 = arith.maximumf %30, %31 : vector<8x2048xf32>
    %33 = arith.truncf %32 : vector<8x2048xf32> to vector<8x2048xbf16>
    %c0_15 = arith.constant 0 : index
    %c0_16 = arith.constant 0 : index
    %34 = vector.load %arg6[%c0_15, %c0_16] : memref<2048x128xbf16, #tpu.memory_space<vmem>>, vector<2048x128xbf16>
    %cst_17 = arith.constant dense<0.000000e+00> : vector<8x128xf32>
    %35 = tpu.matmul %33, %34, %cst_17 {dimension_numbers = #tpu.dot_dimension_numbers<[1], [0], [0], [1], [0, 0, 1, 1], [], []>} : vector<8x2048xbf16>, vector<2048x128xbf16>, vector<8x128xf32> -> vector<8x128xf32>
    %c0_18 = arith.constant 0 : index
    %c0_19 = arith.constant 0 : index
    %36 = vector.load %arg7[%c0_18, %c0_19] : memref<1x128xf32, #tpu.memory_space<vmem>>, vector<1x128xf32>
    %37 = vector.broadcast %36 : vector<1x128xf32> to vector<8x128xf32>
    %38 = arith.addf %35, %37 : vector<8x128xf32>
    %c0_20 = arith.constant 0 : index
    %c0_21 = arith.constant 0 : index
    %39 = vector.load %arg8[%c0_20, %c0_21] : memref<8x128xf32, #tpu.memory_space<vmem>>, vector<8x128xf32>
    tpu.vector_store %arg8[%c0_20, %c0_21], %38 {strides = array<i32>} : memref<8x128xf32, #tpu.memory_space<vmem>>, vector<8x128xf32>,
    return
  }
  func.func @transform_0(%arg0: i32) -> (i32, i32) {
    %c0_i32 = arith.constant 0 : i32
    %c0_i32_0 = arith.constant 0 : i32
    return %arg0, %c0_i32 : i32, i32
  }
  func.func @transform_1(%arg0: i32) -> (i32, i32) {
    %c0_i32 = arith.constant 0 : i32
    %c0_i32_0 = arith.constant 0 : i32
    %c0_i32_1 = arith.constant 0 : i32
    return %c0_i32, %c0_i32_0 : i32, i32
  }
  func.func @transform_2(%arg0: i32) -> (i32, i32) {
    %c0_i32 = arith.constant 0 : i32
    %c0_i32_0 = arith.constant 0 : i32
    %c0_i32_1 = arith.constant 0 : i32
    return %c0_i32, %c0_i32_0 : i32, i32
  }
  func.func @transform_3(%arg0: i32) -> (i32, i32) {
    %c0_i32 = arith.constant 0 : i32
    %c0_i32_0 = arith.constant 0 : i32
    %c0_i32_1 = arith.constant 0 : i32
    return %c0_i32, %c0_i32_0 : i32, i32
  }
  func.func @transform_4(%arg0: i32) -> (i32, i32) {
    %c0_i32 = arith.constant 0 : i32
    %c0_i32_0 = arith.constant 0 : i32
    %c0_i32_1 = arith.constant 0 : i32
    return %c0_i32, %c0_i32_0 : i32, i32
  }
  func.func @transform_5(%arg0: i32) -> (i32, i32) {
    %c0_i32 = arith.constant 0 : i32
    %c0_i32_0 = arith.constant 0 : i32
    %c0_i32_1 = arith.constant 0 : i32
    return %c0_i32, %c0_i32_0 : i32, i32
  }
  func.func @transform_6(%arg0: i32) -> (i32, i32) {
    %c0_i32 = arith.constant 0 : i32
    %c0_i32_0 = arith.constant 0 : i32
    %c0_i32_1 = arith.constant 0 : i32
    return %c0_i32, %c0_i32_0 : i32, i32
  }
  func.func @transform_7(%arg0: i32) -> (i32, i32) {
    %c0_i32 = arith.constant 0 : i32
    %c0_i32_0 = arith.constant 0 : i32
    return %arg0, %c0_i32 : i32, i32
  }
}

</mosaic_0001>

<bundles_post_ra>
// kernel: simple_mlp_pallas.1
= control target key start
LH: loop header
LB: loop body
LE: loop exit
PB: predicated region body
PF: predicated region fallthrough
CT: control target
= control target key end

     0   :  { %12 = vsyncpa [#allocation3], 0  ;;  %s7896_s0 = inlined_call_operand.vmem [shape: f32[16,256], index: 0, kind: input, shape index: {}]   ;;  %s7897_s1 = inlined_call_operand.vmem [shape: f32[1,256], index: 1, kind: input, shape index: {}]   ;;  %s7898_s2 = inlined_call_operand.vmem [shape: f32[1,256], index: 2, kind: input, shape index: {}]   ;;  %s7899_s3 = inlined_call_operand.vmem [shape: bf16[256,2048], index: 3, kind: input, shape index: {}]   ;;  %s7900_s4 = inlined_call_operand.vmem [shape: f32[1,2048], index: 4, kind: input, shape index: {}]   ;;  %s7901_s5 = inlined_call_operand.vmem [shape: bf16[2048,128], index: 5, kind: input, shape index: {}]   ;;  %s7902_s6 = inlined_call_operand.vmem [shape: f32[1,128], index: 6, kind: input, shape index: {}]   ;;  %s7903_s7 = inlined_call_operand.hbm [shape: f32[16,128], index: 7, kind: output, shape index: {}]  }
   0x1   :  { %14 = vsyncpa [#allocation3 + $0x1], 0  ;;  %s5743_s24 = smov 0   ;;  %s5745_s25 = smov 0  }
   0x2   :  { %s5747_s26 = smov 0   ;;  %s5749_s27 = smov 0  }
   0x3 LB: > { %s5764_s28 = sadd.s32 4294967295, %s5700_s27   ;;  %s3661_s29 = sadd.s32 4294967294, %s5700_s27   ;;  %s5700_s27 = sphi %s5749_s27, %s7909_s27   ;;  %s5696_s26 = sphi %s5747_s26, %s7908_s26   ;;  %s5692_s25 = sphi %s5745_s25, %s7907_s25   ;;  %s5688_s24 = sphi %s5743_s24, %s7906_s24  }
   0x4   : > { %s5768_s30 = sadd.s32 1, %s5700_s27   ;;  %s179_s8 = sadd.s32 1, %s5696_s26 }
   0x5   : > { %s176_s9 = ssub.s32 %s5700_s27, %s5768_s30  ;;  %p189_p0 = scmp.ne.s32.totalorder %s5696_s26, %s5692_s25 }
   0x6   : > { %p177_p1 = scmp.eq.s32.totalorder %s176_s9, 0  ;;  %p190_p2 = scmp.eq.s32.totalorder %s5764_s28, 1 }
   0x7   : > { %p195_p3 = scmp.ne.s32.totalorder %s5692_s25, %s5688_s24  ;;  %p196_p4 = scmp.eq.s32.totalorder %s3661_s29, 1 }
   0x8   : > { %s5779_s10 = scalar_select %p177_p1, %s5696_s26, %s179_s8  }
   0x9   : > { %p5781_p5 = por %p190_p2, %p189_p0  ;;  %p5785_p6 = por %p196_p4, %p195_p3 }
   0xa   : > { %p3664_p7 = scmp.ge.s32.totalorder %s5700_s27, 1  ;;  %p240_p8 = scmp.lt.s32.totalorder %s5700_s27, 3 }
   0xc   : > { %p241_p9 = pnand %p3664_p7, %p240_p8 }
   0xd   : > { %p272_p10 = scmp.lt.s32.totalorder (!%p241_p9), %s5764_s28, 1  ;;  %s269_s20 = sand.u32 (!%p241_p9), 1, %s5692_s25  }
   0xe   : > { %244 = sbr.rel (%p241_p9) target bundleno = 772 (0x304), region = 48  ;;  %s5205_s21 = sshll.u32 (!%p241_p9), %s5764_s28, 3 }
   0xf   : > { %s3665_s22 = sshll.u32 (!%p241_p9), %s269_s20, 3  ;;  %s3597_s8 = scalar_lea.hbm (!%p241_p9), %s7903_s7, %s5205_s21 }
  0x10   : > { %s271_s9 = scalar_lea.vmem (!%p241_p9), [#allocation2], %s3665_s22  ;;  %s5658_s19 = scalar_lea.hbm (!%p241_p9), %s7903_s7, 16 }
  0x13   : > { %s273_s13 = scalar_select %p272_p10, %s5764_s28, 1  ;;  %v5702_v3 = vmov 256.0   ;;  %v4118_v7 = vld [vmem:[%s7899_s3 + $0x380] sm:$0xf]  ;;  %v5321_v12 = vld [vmem:[%s7899_s3 + $0x384] sm:$0xf] }
  0x14   : > { %5634 = vrcp.f32 %v5702_v3  ;;  %v5329_v8 = vld [vmem:[%s7899_s3 + $0x3bc] sm:$0xf0]  ;;  %v4120_v13 = vld [vmem:[%s7899_s3 + $0x3c0] sm:$0xf0]  ;;  %s3587_s28 = scalar_lea.sflag [#allocation3], %s269_s20 }
  0x15   : > { %s5208_s14 = sshll.u32 %s273_s13, 4  ;;  %v4630_v9 = vld [vmem:[%s7899_s3 + $0x780] sm:$0xf]  ;;  %v4119_v10 = vor.u32 %v5329_v8, %v4118_v7  ;;  %v4123_v15 = vor.u32 %v5321_v12, %v4120_v13  ;;  %v5449_v16 = vld [vmem:[%s7899_s3 + $0x784] sm:$0xf]  ;;  %s3599_s13 = sshll.u32 %s271_s9, 4  ;;  %s3600_s13 = int_to_ptr.vmem [resolvable:$true] %s3599_s13 }
  0x16   : > { %s276_s17 = scalar_lea.vmem %s7896_s0, %s5208_s14  ;;  %v5457_v11 = vld [vmem:[%s7899_s3 + $0x7bc] sm:$0xf0]  ;;  %v4632_v17 = vld [vmem:[%s7899_s3 + $0x7c0] sm:$0xf0]  ;;  %s3601_s14 = sshll.u32 %s3597_s8, 4  ;;  %s3602_s14 = int_to_ptr.hbm [resolvable:$true] %s3601_s14 }
  0x17   : > { %v5796_v0 = vld [vmem:[%s276_s17] sm:$0xff]  ;;  %v5798_v1 = vld [vmem:[%s276_s17 + $0x8] sm:$0xff]  ;;  %v4631_v14 = vor.u32 %v5457_v11, %v4630_v9  ;;  %1901 = vmatpush.bf16.msra.mxu0 %v4119_v10  ;;  %v4635_v19 = vor.u32 %v5449_v16, %v4632_v17  ;;  %1927 = vmatpush.bf16.msra.mxu2 %v4123_v15  ;;  %s5652_s15 = sshra.s32 %s3602_s14, 4  ;;  %s5653_s15 = int_to_ptr.hbm [resolvable:$true] %s5652_s15 }
  0x18   : > { %v279_v2 = vadd.f32 %v5798_v1, %v5796_v0  ;;  %v4054_v18 = vld [vmem:[%s7899_s3 + $0x300] sm:$0xf]  ;;  %v5305_v25 = vld [vmem:[%s7899_s3 + $0x304] sm:$0xf]  ;;  %s5654_s16 = scalar_lea.hbm %s5653_s15, 8  ;;  %p5659_p0 = scmp.lt.s32.totalorder %s5653_s15, %s7903_s7 }
  0x19   : > { %v5313_v20 = vld [vmem:[%s7899_s3 + $0x33c] sm:$0xf0]  ;;  %1914 = vmatpush.bf16.msra.mxu1 %v4631_v14  ;;  %v4056_v26 = vld [vmem:[%s7899_s3 + $0x340] sm:$0xf0]  ;;  %1940 = vmatpush.bf16.msra.mxu3 %v4635_v19  ;;  %p5655_p11 = scmp.ne.s32.totalorder %s5653_s15, %s5654_s16  ;;  %p5660_p1 = scmp.lt.s32.totalorder %s5658_s19, %s5654_s16 }
  0x1a   : > { %280 = vadd.xlane.f32.xlu0 %v279_v2  ;;  %v5802_v4 = vpop.eup %5634  ;;  %v4566_v21 = vld [vmem:[%s7899_s3 + $0x700] sm:$0xf]  ;;  %v4055_v23 = vor.u32 %v5313_v20, %v4054_v18  ;;  %v5433_v27 = vld [vmem:[%s7899_s3 + $0x704] sm:$0xf]  ;;  %v4059_v28 = vor.u32 %v5305_v25, %v4056_v26 }
  0x1b   : > { %v5805_v5 = vmul.f32 256.0, %v5802_v4  ;;  %v5441_v22 = vld [vmem:[%s7899_s3 + $0x73c] sm:$0xf0]  ;;  %v4568_v29 = vld [vmem:[%s7899_s3 + $0x740] sm:$0xf0]  ;;  %vm287_vm0 = vweird.f32 %v5802_v4  ;;  %p5656_p12 = pnand %p5655_p11, %p5781_p5  ;;  %p5661_p2 = por %p5660_p1, %p5659_p0 }
  0x1c   : > { %v4567_v24 = vor.u32 %v5441_v22, %v4566_v21  ;;  %v3990_v30 = vld [vmem:[%s7899_s3 + $0x280] sm:$0xf]  ;;  %v4571_v32 = vor.u32 %v5433_v27, %v4568_v29  ;;  %v5289_v35 = vld [vmem:[%s7899_s3 + $0x284] sm:$0xf]  ;;  %1902 = vmatpush.bf16.msra.mxu0 %v4055_v23  ;;  %1928 = vmatpush.bf16.msra.mxu2 %v4059_v28 }
  0x1d   : > { %v284_v6 = vsub.f32 1.0, %v5805_v5  ;;  %v5297_v31 = vld [vmem:[%s7899_s3 + $0x2bc] sm:$0xf0]  ;;  %v3992_v37 = vld [vmem:[%s7899_s3 + $0x2c0] sm:$0xf0]  ;;  %p5657_p13 = pneg %p5656_p12 }
  0x1e   : > { %v4502_v33 = vld [vmem:[%s7899_s3 + $0x680] sm:$0xf]  ;;  %v3991_v36 = vor.u32 %v5297_v31, %v3990_v30  ;;  %v5417_v38 = vld [vmem:[%s7899_s3 + $0x684] sm:$0xf]  ;;  %1915 = vmatpush.bf16.msra.mxu1 %v4567_v24  ;;  %v3995_v41 = vor.u32 %v5289_v35, %v3992_v37  ;;  %1941 = vmatpush.bf16.msra.mxu3 %v4571_v32 }
  0x1f   : > { %v5425_v34 = vld [vmem:[%s7899_s3 + $0x6bc] sm:$0xf0]  ;;  %v4504_v39 = vld [vmem:[%s7899_s3 + $0x6c0] sm:$0xf0]  ;;  %v285_v57 = vmul.f32 %v5802_v4, %v284_v6  ;;  %p5662_p3 = pnand %p5661_p2, %p5657_p13 }
  0x20   : > { %v4503_v40 = vor.u32 %v5425_v34, %v4502_v33  ;;  %v3926_v42 = vld [vmem:[%s7899_s3 + $0x200] sm:$0xf]  ;;  %v4507_v45 = vor.u32 %v5417_v38, %v4504_v39  ;;  %v5273_v47 = vld [vmem:[%s7899_s3 + $0x204] sm:$0xf]  ;;  %1903 = vmatpush.bf16.msra.mxu0 %v3991_v36  ;;  %1929 = vmatpush.bf16.msra.mxu2 %v3995_v41 }
  0x21   : > { %v5281_v43 = vld [vmem:[%s7899_s3 + $0x23c] sm:$0xf0]  ;;  %v3928_v48 = vld [vmem:[%s7899_s3 + $0x240] sm:$0xf0]  ;;  %v286_v9 = vadd.f32 %v5802_v4, %v285_v57  ;;  %v5450_v57 = vld [vmem:[%s7899_s3 + $0x78c] sm:$0xf] }
  0x22   : > { %v4438_v44 = vld [vmem:[%s7899_s3 + $0x600] sm:$0xf]  ;;  %v5401_v49 = vld [vmem:[%s7899_s3 + $0x604] sm:$0xf]  ;;  %v3927_v51 = vor.u32 %v5281_v43, %v3926_v42  ;;  %1916 = vmatpush.bf16.msra.mxu1 %v4503_v40  ;;  %v3931_v53 = vor.u32 %v5273_v47, %v3928_v48  ;;  %1942 = vmatpush.bf16.msra.mxu3 %v4507_v45  ;;  %v4126_v48 = vld [vmem:[%s7899_s3 + $0x388] sm:$0xf] }
  0x23   : > { %v5409_v46 = vld [vmem:[%s7899_s3 + $0x63c] sm:$0xf0]  ;;  %v4440_v50 = vld [vmem:[%s7899_s3 + $0x640] sm:$0xf0]  ;;  %v5965_v22 = vsel %vm287_vm0, %v5802_v4, %v286_v9  ;;  %v4576_v9 = vld [vmem:[%s7899_s3 + $0x748] sm:$0xf0] }
  0x24   : > { %v4439_v52 = vor.u32 %v5409_v46, %v4438_v44  ;;  %v3862_v54 = vld [vmem:[%s7899_s3 + $0x180] sm:$0xf]  ;;  %v4443_v58 = vor.u32 %v5401_v49, %v4440_v50  ;;  %v5257_v60 = vld [vmem:[%s7899_s3 + $0x184] sm:$0xf]  ;;  %1904 = vmatpush.bf16.msra.mxu0 %v3927_v51  ;;  %1930 = vmatpush.bf16.msra.mxu2 %v3931_v53  ;;  %v5330_v50 = vld [vmem:[%s7899_s3 + $0x3c4] sm:$0xf0] }
  0x25   : > { %v5265_v55 = vld [vmem:[%s7899_s3 + $0x1bc] sm:$0xf0]  ;;  %v3864_v61 = vld [vmem:[%s7899_s3 + $0x1c0] sm:$0xf0]  ;;  %v4638_v51 = vld [vmem:[%s7899_s3 + $0x788] sm:$0xf]  ;;  %v4127_v53 = vor.u32 %v5330_v50, %v4126_v48 }
  0x26   : > { %v4374_v56 = vld [vmem:[%s7899_s3 + $0x580] sm:$0xf]  ;;  %v5385_v62 = vld [vmem:[%s7899_s3 + $0x584] sm:$0xf]  ;;  %v3863_v2 = vor.u32 %v5265_v55, %v3862_v54  ;;  %1917 = vmatpush.bf16.msra.mxu1 %v4439_v52  ;;  %v3867_v5 = vor.u32 %v5257_v60, %v3864_v61  ;;  %1943 = vmatpush.bf16.msra.mxu3 %v4443_v58  ;;  %v5458_v52 = vld [vmem:[%s7899_s3 + $0x7c4] sm:$0xf0] }
  0x27   : > { %v5393_v59 = vld [vmem:[%s7899_s3 + $0x5bc] sm:$0xf0]  ;;  %v4376_v63 = vld [vmem:[%s7899_s3 + $0x5c0] sm:$0xf0]  ;;  %v4639_v54 = vor.u32 %v5458_v52, %v4638_v51  ;;  %v5322_v55 = vld [vmem:[%s7899_s3 + $0x38c] sm:$0xf] }
  0x28   : > { %v4375_v3 = vor.u32 %v5393_v59, %v4374_v56  ;;  %v3798_v6 = vld [vmem:[%s7899_s3 + $0x100] sm:$0xf]  ;;  %v4379_v10 = vor.u32 %v5385_v62, %v4376_v63  ;;  %v5241_v12 = vld [vmem:[%s7899_s3 + $0x104] sm:$0xf]  ;;  %1905 = vmatpush.bf16.msra.mxu0 %v3863_v2  ;;  %1931 = vmatpush.bf16.msra.mxu2 %v3867_v5  ;;  %v4128_v56 = vld [vmem:[%s7899_s3 + $0x3c8] sm:$0xf0] }
  0x29   : > { %v5249_v7 = vld [vmem:[%s7899_s3 + $0x13c] sm:$0xf0]  ;;  %v3800_v13 = vld [vmem:[%s7899_s3 + $0x140] sm:$0xf0]  ;;  %v4131_v58 = vor.u32 %v5322_v55, %v4128_v56  ;;  %v4640_v59 = vld [vmem:[%s7899_s3 + $0x7c8] sm:$0xf0] }
  0x2a   : > { %v4310_v8 = vld [vmem:[%s7899_s3 + $0x500] sm:$0xf]  ;;  %v5369_v14 = vld [vmem:[%s7899_s3 + $0x504] sm:$0xf]  ;;  %v3799_v16 = vor.u32 %v5249_v7, %v3798_v6  ;;  %1918 = vmatpush.bf16.msra.mxu1 %v4375_v3  ;;  %v3803_v18 = vor.u32 %v5241_v12, %v3800_v13  ;;  %1944 = vmatpush.bf16.msra.mxu3 %v4379_v10  ;;  %v4062_v60 = vld [vmem:[%s7899_s3 + $0x308] sm:$0xf]  ;;  %v4643_v62 = vor.u32 %v5450_v57, %v4640_v59 }
  0x2b   : > { %v5377_v11 = vld [vmem:[%s7899_s3 + $0x53c] sm:$0xf0]  ;;  %v4312_v15 = vld [vmem:[%s7899_s3 + $0x540] sm:$0xf0]  ;;  %v5314_v61 = vld [vmem:[%s7899_s3 + $0x344] sm:$0xf0] }
  0x2c   : > { %v4311_v17 = vor.u32 %v5377_v11, %v4310_v8  ;;  %v3734_v19 = vld [vmem:[%s7899_s3 + $0x80] sm:$0xf]  ;;  %v4315_v23 = vor.u32 %v5369_v14, %v4312_v15  ;;  %v5225_v25 = vld [vmem:[%s7899_s3 + $0x84] sm:$0xf]  ;;  %1906 = vmatpush.bf16.msra.mxu0 %v3799_v16  ;;  %1932 = vmatpush.bf16.msra.mxu2 %v3803_v18  ;;  %v4063_v63 = vor.u32 %v5314_v61, %v4062_v60  ;;  %v4574_v2 = vld [vmem:[%s7899_s3 + $0x708] sm:$0xf] }
  0x2d   : > { %v5233_v20 = vld [vmem:[%s7899_s3 + $0xbc] sm:$0xf0]  ;;  %v3736_v26 = vld [vmem:[%s7899_s3 + $0xc0] sm:$0xf0]  ;;  %v5442_v3 = vld [vmem:[%s7899_s3 + $0x744] sm:$0xf0] }
  0x2e   : > { %v4246_v21 = vld [vmem:[%s7899_s3 + $0x480] sm:$0xf]  ;;  %v5353_v27 = vld [vmem:[%s7899_s3 + $0x484] sm:$0xf]  ;;  %v3735_v29 = vor.u32 %v5233_v20, %v3734_v19  ;;  %1919 = vmatpush.bf16.msra.mxu1 %v4311_v17  ;;  %v3739_v32 = vor.u32 %v5225_v25, %v3736_v26  ;;  %1945 = vmatpush.bf16.msra.mxu3 %v4315_v23  ;;  %v5306_v5 = vld [vmem:[%s7899_s3 + $0x30c] sm:$0xf]  ;;  %v4575_v6 = vor.u32 %v5442_v3, %v4574_v2 }
  0x2f   : > { %v5361_v24 = vld [vmem:[%s7899_s3 + $0x4bc] sm:$0xf0]  ;;  %v4248_v4 = vld [vmem:[%s7899_s3 + $0x4c0] sm:$0xf0]  ;;  %v4064_v7 = vld [vmem:[%s7899_s3 + $0x348] sm:$0xf0] }
  0x30   : > { %v4247_v31 = vor.u32 %v5361_v24, %v4246_v21  ;;  %v4251_v33 = vor.u32 %v5353_v27, %v4248_v4  ;;  %1907 = vmatpush.bf16.msra.mxu0 %v3735_v29  ;;  %1933 = vmatpush.bf16.msra.mxu2 %v3739_v32  ;;  %v4182_v39 = vld [vmem:[%s7899_s3 + $0x400] sm:$0xf]  ;;  %v5209_v42 = vld [vmem:[%s7899_s3 + $0x4] sm:$0xf]  ;;  %v5434_v8 = vld [vmem:[%s7899_s3 + $0x70c] sm:$0xf]  ;;  %v4067_v10 = vor.u32 %v5306_v5, %v4064_v7 }
  0x31   : > { %v5345_v41 = vld [vmem:[%s7899_s3 + $0x43c] sm:$0xf0]  ;;  %v3672_v43 = vld [vmem:[%s7899_s3 + $0x40] sm:$0xf0]  ;;  %v4579_v11 = vor.u32 %v5434_v8, %v4576_v9  ;;  %v3998_v12 = vld [vmem:[%s7899_s3 + $0x288] sm:$0xf] }
  0x32   : > { %1920 = vmatpush.bf16.msra.mxu1 %v4247_v31  ;;  %1946 = vmatpush.bf16.msra.mxu3 %v4251_v33  ;;  %v4183_v44 = vor.u32 %v5345_v41, %v4182_v39  ;;  %v3675_v45 = vor.u32 %v5209_v42, %v3672_v43  ;;  %v5337_v46 = vld [vmem:[%s7899_s3 + $0x404] sm:$0xf]  ;;  %v5298_v13 = vld [vmem:[%s7899_s3 + $0x2c4] sm:$0xf0]  ;;  %v5290_v17 = vld [vmem:[%s7899_s3 + $0x28c] sm:$0xf] }
  0x33   : > { %v4184_v47 = vld [vmem:[%s7899_s3 + $0x440] sm:$0xf0]  ;;  %v4510_v14 = vld [vmem:[%s7899_s3 + $0x688] sm:$0xf]  ;;  %v3999_v15 = vor.u32 %v5298_v13, %v3998_v12  ;;  %v4000_v18 = vld [vmem:[%s7899_s3 + $0x2c8] sm:$0xf0] }
  0x34   : > { %v4187_v49 = vor.u32 %v5337_v46, %v4184_v47  ;;  %1934 = vmatpush.bf16.msra.mxu2 %v3675_v45  ;;  %v5426_v16 = vld [vmem:[%s7899_s3 + $0x6c4] sm:$0xf0]  ;;  %v4003_v20 = vor.u32 %v5290_v17, %v4000_v18  ;;  %v5418_v21 = vld [vmem:[%s7899_s3 + $0x68c] sm:$0xf] }
  0x35   : > { %v4511_v19 = vor.u32 %v5426_v16, %v4510_v14  ;;  %v4512_v23 = vld [vmem:[%s7899_s3 + $0x6c8] sm:$0xf0]  ;;  %v3934_v25 = vld [vmem:[%s7899_s3 + $0x208] sm:$0xf] }
  0x36   : > { %1921 = vmatpush.bf16.msra.mxu1 %v4183_v44  ;;  %1947 = vmatpush.bf16.msra.mxu3 %v4187_v49  ;;  %v4515_v24 = vor.u32 %v5418_v21, %v4512_v23  ;;  %v5282_v26 = vld [vmem:[%s7899_s3 + $0x244] sm:$0xf0]  ;;  %v5274_v29 = vld [vmem:[%s7899_s3 + $0x20c] sm:$0xf] }
  0x37   : > { %v4446_v27 = vld [vmem:[%s7899_s3 + $0x608] sm:$0xf]  ;;  %v3935_v4 = vor.u32 %v5282_v26, %v3934_v25  ;;  %v5402_v33 = vld [vmem:[%s7899_s3 + $0x60c] sm:$0xf] }
  0x38   : > { %1979 = vmatpush.bf16.msrb.mxu2 %v4131_v58  ;;  %v5258_v41 = vld [vmem:[%s7899_s3 + $0x18c] sm:$0xf]  ;;  %v3806_v48 = vld [vmem:[%s7899_s3 + $0x108] sm:$0xf] }
  0x39   : > { %v3872_v42 = vld [vmem:[%s7899_s3 + $0x1c8] sm:$0xf0]  ;;  %v5250_v49 = vld [vmem:[%s7899_s3 + $0x144] sm:$0xf0] }
  0x3a   : > { %1966 = vmatpush.bf16.msrb.mxu1 %v4639_v54  ;;  %1992 = vmatpush.bf16.msrb.mxu3 %v4643_v62  ;;  %v3875_v44 = vor.u32 %v5258_v41, %v3872_v42  ;;  %v5386_v45 = vld [vmem:[%s7899_s3 + $0x58c] sm:$0xf]  ;;  %v4318_v50 = vld [vmem:[%s7899_s3 + $0x508] sm:$0xf]  ;;  %v3807_v51 = vor.u32 %v5250_v49, %v3806_v48  ;;  %v4134_v42 = vld [vmem:[%s7899_s3 + $0x390] sm:$0xf] }
  0x3b   : > { %v4384_v46 = vld [vmem:[%s7899_s3 + $0x5c8] sm:$0xf0]  ;;  %v5378_v52 = vld [vmem:[%s7899_s3 + $0x544] sm:$0xf0]  ;;  %v5451_v48 = vld [vmem:[%s7899_s3 + $0x794] sm:$0xf] }
  0x3c   : > { %1980 = vmatpush.bf16.msrb.mxu2 %v4067_v10  ;;  %v4387_v47 = vor.u32 %v5386_v45, %v4384_v46  ;;  %v3808_v54 = vld [vmem:[%s7899_s3 + $0x148] sm:$0xf0]  ;;  %v4319_v55 = vor.u32 %v5378_v52, %v4318_v50  ;;  %v3742_v60 = vld [vmem:[%s7899_s3 + $0x88] sm:$0xf]  ;;  %v4648_v49 = vld [vmem:[%s7899_s3 + $0x7d0] sm:$0xf0] }
  0x3d   : > { %v5370_v57 = vld [vmem:[%s7899_s3 + $0x50c] sm:$0xf]  ;;  %v5234_v61 = vld [vmem:[%s7899_s3 + $0xc4] sm:$0xf0] }
  0x3e   : > { %1967 = vmatpush.bf16.msrb.mxu1 %v4575_v6  ;;  %1993 = vmatpush.bf16.msrb.mxu3 %v4579_v11  ;;  %v4320_v58 = vld [vmem:[%s7899_s3 + $0x548] sm:$0xf0]  ;;  %v4254_v62 = vld [vmem:[%s7899_s3 + $0x488] sm:$0xf] }
  0x3f   : > { %v4323_v59 = vor.u32 %v5370_v57, %v4320_v58  ;;  %v5362_v2 = vld [vmem:[%s7899_s3 + $0x4c4] sm:$0xf0]  ;;  %v5226_v3 = vld [vmem:[%s7899_s3 + $0x8c] sm:$0xf]  ;;  %v4651_v57 = vor.u32 %v5451_v48, %v4648_v49  ;;  %v4582_v58 = vld [vmem:[%s7899_s3 + $0x710] sm:$0xf] }
  0x40   : > { %1981 = vmatpush.bf16.msrb.mxu2 %v4003_v20  ;;  %v3744_v5 = vld [vmem:[%s7899_s3 + $0xc8] sm:$0xf0]  ;;  %v4255_v6 = vor.u32 %v5362_v2, %v4254_v62  ;;  %v3678_v11 = vld [vmem:[%s7899_s3 + $0x8] sm:$0xf]  ;;  %v5435_v62 = vld [vmem:[%s7899_s3 + $0x714] sm:$0xf] }
  0x41   : > { %v3747_v7 = vor.u32 %v5226_v3, %v3744_v5  ;;  %v5354_v8 = vld [vmem:[%s7899_s3 + $0x48c] sm:$0xf]  ;;  %v5218_v12 = vld [vmem:[%s7899_s3 + $0x44] sm:$0xf0]  ;;  %v4006_v5 = vld [vmem:[%s7899_s3 + $0x290] sm:$0xf] }
  0x42   : > { %1968 = vmatpush.bf16.msrb.mxu1 %v4511_v19  ;;  %1994 = vmatpush.bf16.msrb.mxu3 %v4515_v24  ;;  %v4256_v9 = vld [vmem:[%s7899_s3 + $0x4c8] sm:$0xf0]  ;;  %v4190_v13 = vld [vmem:[%s7899_s3 + $0x408] sm:$0xf]  ;;  %v3679_v14 = vor.u32 %v5218_v12, %v3678_v11  ;;  %v5291_v11 = vld [vmem:[%s7899_s3 + $0x294] sm:$0xf] }
  0x43   : > { %v4259_v10 = vor.u32 %v5354_v8, %v4256_v9  ;;  %v5210_v16 = vld [vmem:[%s7899_s3 + $0xc] sm:$0xf]  ;;  %v4518_v9 = vld [vmem:[%s7899_s3 + $0x690] sm:$0xf]  ;;  %v4008_v12 = vld [vmem:[%s7899_s3 + $0x2d0] sm:$0xf0] }
  0x44   : > { %v3680_v17 = vld [vmem:[%s7899_s3 + $0x48] sm:$0xf0] }
  0x45   : > { %v3683_v19 = vor.u32 %v5210_v16, %v3680_v17  ;;  %v5338_v20 = vld [vmem:[%s7899_s3 + $0x40c] sm:$0xf]  ;;  %v3942_v17 = vld [vmem:[%s7899_s3 + $0x210] sm:$0xf] }
  0x46   : > { %v4192_v21 = vld [vmem:[%s7899_s3 + $0x448] sm:$0xf0] }
  0x47   : > { %v4195_v23 = vor.u32 %v5338_v20, %v4192_v21  ;;  %v4454_v21 = vld [vmem:[%s7899_s3 + $0x610] sm:$0xf] }
  0x8d   : > { %v281_v28 = vpop.xlane.xlu0 %280 }
  0x8e   : > { %v289_v30 = vmul.f32 %v5965_v22, %v281_v28  ;;  %v5410_v28 = vld [vmem:[%s7899_s3 + $0x644] sm:$0xf0] }
  0x8f   : > { %v4447_v31 = vor.u32 %v5410_v28, %v4446_v27 }
  0x90   : > { %v5984_v34 = vsub.f32 %v5796_v0, %v289_v30  ;;  %v5987_v35 = vsub.f32 %v5798_v1, %v289_v30  ;;  %v3670_v0 = vld [vmem:[%s7899_s3] sm:$0xf]  ;;  %v3936_v30 = vld [vmem:[%s7899_s3 + $0x248] sm:$0xf0] }
  0x91   : > { %v5217_v1 = vld [vmem:[%s7899_s3 + $0x3c] sm:$0xf0]  ;;  %v3939_v32 = vor.u32 %v5274_v29, %v3936_v30  ;;  %1969 = vmatpush.bf16.msrb.mxu1 %v4447_v31 }
  0x92   : > { %v292_v36 = vmul.f32 %v5984_v34, %v5984_v34  ;;  %v293_v37 = vmul.f32 %v5987_v35, %v5987_v35  ;;  %v3671_v40 = vor.u32 %v5217_v1, %v3670_v0  ;;  %v5266_v0 = vld [vmem:[%s7899_s3 + $0x1c4] sm:$0xf0]  ;;  %v311_v30 = vld [vmem:[%s7897_s1] sm:$0x3] }
  0x93   : > { %v4382_v1 = vld [vmem:[%s7899_s3 + $0x588] sm:$0xf]  ;;  %1982 = vmatpush.bf16.msrb.mxu2 %v3939_v32  ;;  %v319_v32 = vld [vmem:[%s7898_s2] sm:$0x3] }
  0x94   : > { %v294_v38 = vadd.f32 %v293_v37, %v292_v36  ;;  %1908 = vmatpush.bf16.msra.mxu0 %v3671_v40  ;;  %v4448_v36 = vld [vmem:[%s7899_s3 + $0x648] sm:$0xf0]  ;;  %v5394_v40 = vld [vmem:[%s7899_s3 + $0x5c4] sm:$0xf0] }
  0x95   : > { %v4451_v37 = vor.u32 %v5402_v33, %v4448_v36  ;;  %v4383_v43 = vor.u32 %v5394_v40, %v4382_v1  ;;  %v314_v36 = vperm.slane %v311_v30, 1 }
  0x96   : > { %295 = vadd.xlane.f32.xlu0 %v294_v38  ;;  %v3870_v38 = vld [vmem:[%s7899_s3 + $0x188] sm:$0xf] }
  0x97   : > { %v3871_v39 = vor.u32 %v5266_v0, %v3870_v38  ;;  %1995 = vmatpush.bf16.msrb.mxu3 %v4451_v37  ;;  %1970 = vmatpush.bf16.msrb.mxu1 %v4383_v43  ;;  %v321_v38 = vperm.slane %v319_v32, 0  ;;  %v322_v0 = vperm.slane %v319_v32, 1  ;;  %v5331_v43 = vld [vmem:[%s7899_s3 + $0x3cc] sm:$0xf0] }
  0x98   : > { %1953 = vmatpush.bf16.msrb.mxu0 %v4127_v53  ;;  %v5242_v53 = vld [vmem:[%s7899_s3 + $0x10c] sm:$0xf]  ;;  %1983 = vmatpush.bf16.msrb.mxu2 %v3875_v44  ;;  %v4646_v44 = vld [vmem:[%s7899_s3 + $0x790] sm:$0xf]  ;;  %v4135_v52 = vor.u32 %v5331_v43, %v4134_v42 }
  0x99   : > { %v3811_v56 = vor.u32 %v5242_v53, %v3808_v54  ;;  %v4070_v54 = vld [vmem:[%s7899_s3 + $0x310] sm:$0xf] }
  0x9b   : > { %1996 = vmatpush.bf16.msrb.mxu3 %v4387_v47  ;;  %1971 = vmatpush.bf16.msrb.mxu1 %v4319_v55  ;;  %v4136_v47 = vld [vmem:[%s7899_s3 + $0x3d0] sm:$0xf0]  ;;  %v5315_v55 = vld [vmem:[%s7899_s3 + $0x34c] sm:$0xf0] }
  0x9c   : > { %1954 = vmatpush.bf16.msrb.mxu0 %v4063_v63  ;;  %v3743_v63 = vor.u32 %v5234_v61, %v3742_v60  ;;  %1984 = vmatpush.bf16.msrb.mxu2 %v3811_v56  ;;  %v5307_v60 = vld [vmem:[%s7899_s3 + $0x314] sm:$0xf]  ;;  %v4071_v2 = vor.u32 %v5315_v55, %v4070_v54 }
  0x9d   : > { %v4072_v61 = vld [vmem:[%s7899_s3 + $0x350] sm:$0xf0] }
  0x9f   : > { %1997 = vmatpush.bf16.msrb.mxu3 %v4323_v59  ;;  %1972 = vmatpush.bf16.msrb.mxu1 %v4255_v6  ;;  %v5443_v59 = vld [vmem:[%s7899_s3 + $0x74c] sm:$0xf0] }
  0xa0   : > { %1955 = vmatpush.bf16.msrb.mxu0 %v3999_v15  ;;  %v5346_v15 = vld [vmem:[%s7899_s3 + $0x444] sm:$0xf0]  ;;  %1985 = vmatpush.bf16.msrb.mxu2 %v3747_v7  ;;  %v4583_v3 = vor.u32 %v5443_v59, %v4582_v58  ;;  %v5299_v6 = vld [vmem:[%s7899_s3 + $0x2cc] sm:$0xf0]  ;;  %v4075_v7 = vor.u32 %v5307_v60, %v4072_v61  ;;  %v5227_v58 = vld [vmem:[%s7899_s3 + $0x94] sm:$0xf] }
  0xa1   : > { %v4191_v18 = vor.u32 %v5346_v15, %v4190_v13  ;;  %v5419_v13 = vld [vmem:[%s7899_s3 + $0x694] sm:$0xf]  ;;  %v4007_v15 = vor.u32 %v5299_v6, %v4006_v5  ;;  %v4198_v5 = vld [vmem:[%s7899_s3 + $0x410] sm:$0xf] }
  0xa2   : > { %v3752_v59 = vld [vmem:[%s7899_s3 + $0xd0] sm:$0xf0]  ;;  %v5347_v6 = vld [vmem:[%s7899_s3 + $0x44c] sm:$0xf0] }
  0xa3   : > { %1998 = vmatpush.bf16.msrb.mxu3 %v4259_v10  ;;  %1973 = vmatpush.bf16.msrb.mxu1 %v4191_v18  ;;  %v5427_v10 = vld [vmem:[%s7899_s3 + $0x6cc] sm:$0xf0]  ;;  %v5355_v60 = vld [vmem:[%s7899_s3 + $0x494] sm:$0xf] }
  0xa4   : > { %1956 = vmatpush.bf16.msrb.mxu0 %v3935_v4  ;;  %1986 = vmatpush.bf16.msrb.mxu2 %v3683_v19  ;;  %v4519_v16 = vor.u32 %v5427_v10, %v4518_v9  ;;  %v5283_v18 = vld [vmem:[%s7899_s3 + $0x24c] sm:$0xf0]  ;;  %v4011_v19 = vor.u32 %v5291_v11, %v4008_v12  ;;  %v4264_v61 = vld [vmem:[%s7899_s3 + $0x4d0] sm:$0xf0] }
  0xa5   : > { %v5211_v9 = vld [vmem:[%s7899_s3 + $0x14] sm:$0xf] }
  0xa6   : > { %v3688_v10 = vld [vmem:[%s7899_s3 + $0x50] sm:$0xf0] }
  0xa7   : > { %1999 = vmatpush.bf16.msrb.mxu3 %v4195_v23  ;;  %v5411_v23 = vld [vmem:[%s7899_s3 + $0x64c] sm:$0xf0]  ;;  %v5339_v11 = vld [vmem:[%s7899_s3 + $0x414] sm:$0xf] }
  0xa8   : > { %1957 = vmatpush.bf16.msrb.mxu0 %v3871_v39  ;;  %v4200_v12 = vld [vmem:[%s7899_s3 + $0x450] sm:$0xf0] }
  0xac   : > { %1958 = vmatpush.bf16.msrb.mxu0 %v3807_v51 }
  0xb0   : > { %1959 = vmatpush.bf16.msrb.mxu0 %v3743_v63  ;;  %v4584_v63 = vld [vmem:[%s7899_s3 + $0x750] sm:$0xf0] }
  0xb1   : > { %v4587_v8 = vor.u32 %v5435_v62, %v4584_v63  ;;  %v3686_v62 = vld [vmem:[%s7899_s3 + $0x10] sm:$0xf] }
  0xb4   : > { %1960 = vmatpush.bf16.msrb.mxu0 %v3679_v14  ;;  %v4520_v14 = vld [vmem:[%s7899_s3 + $0x6d0] sm:$0xf0] }
  0xb5   : > { %v4523_v20 = vor.u32 %v5419_v13, %v4520_v14  ;;  %v4142_v13 = vld [vmem:[%s7899_s3 + $0x398] sm:$0xf] }
  0xb6   : > { %v5332_v14 = vld [vmem:[%s7899_s3 + $0x3d4] sm:$0xf0] }
 0x109   : > { %v296_v24 = vpop.xlane.xlu0 %295 }
 0x10a   : > { %v297_v25 = vmul.f32 %v296_v24, %v5965_v22  ;;  %v313_v22 = vperm.slane %v311_v30, 0  ;;  %v5275_v24 = vld [vmem:[%s7899_s3 + $0x214] sm:$0xf]  ;;  %v5267_v30 = vld [vmem:[%s7899_s3 + $0x1cc] sm:$0xf0] }
 0x10c   : > { %v298_v26 = vadd.f32 1e-05, %v297_v25  ;;  %v3944_v25 = vld [vmem:[%s7899_s3 + $0x250] sm:$0xf0] }
 0x10e   : > { %5636 = vrsqrt.f32 %v298_v26  ;;  %vm305_vm2 = vweird.f32 %v298_v26 }
 0x114   : > { %v5637_v27 = vpop.eup %5636 }
 0x115   : > { %v300_v4 = vmul.f32 %v5637_v27, %v298_v26  ;;  %vm306_vm1 = vweird.f32 %v5637_v27  ;;  %v5403_v26 = vld [vmem:[%s7899_s3 + $0x614] sm:$0xf] }
 0x116   : > { %vm307_vm3 = vmor %vm305_vm2, %vm306_vm1 }
 0x117   : > { %v301_v28 = vmul.f32 %v5637_v27, %v300_v4  ;;  %v3943_v4 = vor.u32 %v5283_v18, %v3942_v17  ;;  %v5324_v17 = vld [vmem:[%s7899_s3 + $0x39c] sm:$0xf] }
 0x119   : > { %v302_v29 = vmul.f32 0.5, %v301_v28  ;;  %v4455_v28 = vor.u32 %v5411_v23, %v4454_v21  ;;  %v5452_v21 = vld [vmem:[%s7899_s3 + $0x79c] sm:$0xf] }
 0x11a   : > { %v4656_v23 = vld [vmem:[%s7899_s3 + $0x7d8] sm:$0xf0] }
 0x11b   : > { %v303_v31 = vsub.f32 1.5, %v302_v29  ;;  %v3878_v29 = vld [vmem:[%s7899_s3 + $0x190] sm:$0xf] }
 0x11d   : > { %v304_v33 = vmul.f32 %v5637_v27, %v303_v31  ;;  %v3947_v31 = vor.u32 %v5275_v24, %v3944_v25  ;;  %v3691_v24 = vor.u32 %v5211_v9, %v3688_v10  ;;  %v4203_v25 = vor.u32 %v5339_v11, %v4200_v12  ;;  %v5388_v9 = vld [vmem:[%s7899_s3 + $0x59c] sm:$0xf] }
 0x11e   : > { %v4400_v10 = vld [vmem:[%s7899_s3 + $0x5d8] sm:$0xf0] }
 0x11f   : > { %v308_v37 = vsel %vm307_vm3, %v5637_v27, %v304_v33  ;;  %v4456_v27 = vld [vmem:[%s7899_s3 + $0x650] sm:$0xf0]  ;;  %v4390_v33 = vld [vmem:[%s7899_s3 + $0x590] sm:$0xf] }
 0x120   : > { %v309_v1 = vmul.f32 %v308_v37, %v5984_v34  ;;  %v310_v39 = vmul.f32 %v308_v37, %v5987_v35  ;;  %v5459_v34 = vld [vmem:[%s7899_s3 + $0x7cc] sm:$0xf0]  ;;  %v5323_v35 = vld [vmem:[%s7899_s3 + $0x394] sm:$0xf]  ;;  %v4459_v32 = vor.u32 %v5403_v26, %v4456_v27  ;;  %v4143_v26 = vor.u32 %v5332_v14, %v4142_v13  ;;  %v3822_v13 = vld [vmem:[%s7899_s3 + $0x118] sm:$0xf] }
 0x121   : > { %v4647_v53 = vor.u32 %v5459_v34, %v4646_v44  ;;  %v4139_v56 = vor.u32 %v5323_v35, %v4136_v47  ;;  %v3880_v37 = vld [vmem:[%s7899_s3 + $0x1d0] sm:$0xf0]  ;;  %v4326_v44 = vld [vmem:[%s7899_s3 + $0x510] sm:$0xf]  ;;  %v5252_v14 = vld [vmem:[%s7899_s3 + $0x154] sm:$0xf0] }
 0x122   : > { %v317_v40 = vmul.f32 %v313_v22, %v309_v1  ;;  %v318_v41 = vmul.f32 %v314_v36, %v310_v39  ;;  %v5395_v22 = vld [vmem:[%s7899_s3 + $0x5cc] sm:$0xf0]  ;;  %v5259_v36 = vld [vmem:[%s7899_s3 + $0x194] sm:$0xf]  ;;  %v3879_v1 = vor.u32 %v5267_v30, %v3878_v29  ;;  %v4659_v30 = vor.u32 %v5452_v21, %v4656_v23  ;;  %v5372_v21 = vld [vmem:[%s7899_s3 + $0x51c] sm:$0xf] }
 0x123   : > { %v4391_v39 = vor.u32 %v5395_v22, %v4390_v33  ;;  %v3883_v42 = vor.u32 %v5259_v36, %v3880_v37  ;;  %v5379_v34 = vld [vmem:[%s7899_s3 + $0x54c] sm:$0xf0]  ;;  %v5243_v35 = vld [vmem:[%s7899_s3 + $0x114] sm:$0xf]  ;;  %v5308_v33 = vld [vmem:[%s7899_s3 + $0x31c] sm:$0xf] }
 0x124   : > { %v325_v45 = vadd.f32 %v321_v38, %v317_v40  ;;  %v326_v46 = vadd.f32 %v322_v0, %v318_v41  ;;  %v5387_v38 = vld [vmem:[%s7899_s3 + $0x594] sm:$0xf]  ;;  %v3814_v40 = vld [vmem:[%s7899_s3 + $0x110] sm:$0xf]  ;;  %v4327_v49 = vor.u32 %v5379_v34, %v4326_v44  ;;  %v4080_v22 = vld [vmem:[%s7899_s3 + $0x358] sm:$0xf0] }
 0x125   : > { %v4392_v0 = vld [vmem:[%s7899_s3 + $0x5d0] sm:$0xf0]  ;;  %v5251_v41 = vld [vmem:[%s7899_s3 + $0x14c] sm:$0xf0]  ;;  %v5436_v36 = vld [vmem:[%s7899_s3 + $0x71c] sm:$0xf] }
 0x126   : > { %v6242_v50 = vpack.c.bf16 %v325_v45, %v325_v45  ;;  %v6244_v51 = vpack.c.bf16 %v326_v46, %v326_v46  ;;  %v4395_v43 = vor.u32 %v5387_v38, %v4392_v0  ;;  %v3816_v45 = vld [vmem:[%s7899_s3 + $0x150] sm:$0xf0]  ;;  %v3815_v48 = vor.u32 %v5251_v41, %v3814_v40  ;;  %v4592_v37 = vld [vmem:[%s7899_s3 + $0x758] sm:$0xf0] }
 0x127   : > { %v5371_v46 = vld [vmem:[%s7899_s3 + $0x514] sm:$0xf]  ;;  %v3819_v54 = vor.u32 %v5243_v35, %v3816_v45  ;;  %v4083_v40 = vor.u32 %v5308_v33, %v4080_v22  ;;  %v4595_v41 = vor.u32 %v5436_v36, %v4592_v37  ;;  %v5292_v44 = vld [vmem:[%s7899_s3 + $0x29c] sm:$0xf]  ;;  %v3694_v36 = vld [vmem:[%s7899_s3 + $0x18] sm:$0xf] }
 0x128   : > { %1909 = vmatmul.bf16.vlgmr.msra.gmra.mxu0 %v6242_v50  ;;  %1922 = vmatmul.bf16.vlgmr.msra.gmra.mxu1 %v6244_v51  ;;  %v4328_v47 = vld [vmem:[%s7899_s3 + $0x550] sm:$0xf0]  ;;  %v4016_v34 = vld [vmem:[%s7899_s3 + $0x2d8] sm:$0xf0] }
 0x129   : > { %1935 = vmatmul.bf16.vlgmr.msra.gmra.mxu2 %v6242_v50  ;;  %1948 = vmatmul.bf16.vlgmr.msra.gmra.mxu3 %v6244_v51  ;;  %v4331_v55 = vor.u32 %v5371_v46, %v4328_v47  ;;  %v5420_v35 = vld [vmem:[%s7899_s3 + $0x69c] sm:$0xf] }
 0x12a   : > { %2005 = vmatpush.bf16.msra.mxu0 %v4135_v52  ;;  %2018 = vmatpush.bf16.msra.mxu1 %v4647_v53  ;;  %v3750_v52 = vld [vmem:[%s7899_s3 + $0x90] sm:$0xf]  ;;  %v4528_v45 = vld [vmem:[%s7899_s3 + $0x6d8] sm:$0xf0] }
 0x12b   : > { %2031 = vmatpush.bf16.msra.mxu2 %v4139_v56  ;;  %2044 = vmatpush.bf16.msra.mxu3 %v4651_v57  ;;  %v5235_v53 = vld [vmem:[%s7899_s3 + $0xcc] sm:$0xf0]  ;;  %v4336_v23 = vld [vmem:[%s7899_s3 + $0x558] sm:$0xf0] }
 0x12c   : > { %v4262_v56 = vld [vmem:[%s7899_s3 + $0x490] sm:$0xf]  ;;  %v3751_v63 = vor.u32 %v5235_v53, %v3750_v52  ;;  %v4019_v52 = vor.u32 %v5292_v44, %v4016_v34  ;;  %v4531_v53 = vor.u32 %v5420_v35, %v4528_v45  ;;  %v5356_v33 = vld [vmem:[%s7899_s3 + $0x49c] sm:$0xf]  ;;  %v4150_v35 = vld [vmem:[%s7899_s3 + $0x3a0] sm:$0xf] }
 0x12d   : > { %v5363_v57 = vld [vmem:[%s7899_s3 + $0x4cc] sm:$0xf0]  ;;  %v4272_v22 = vld [vmem:[%s7899_s3 + $0x4d8] sm:$0xf0]  ;;  %v5333_v45 = vld [vmem:[%s7899_s3 + $0x3dc] sm:$0xf0] }
 0x12e   : > { %2006 = vmatpush.bf16.msra.mxu0 %v4071_v2  ;;  %2019 = vmatpush.bf16.msra.mxu1 %v4583_v3  ;;  %v4263_v2 = vor.u32 %v5363_v57, %v4262_v56  ;;  %v5219_v3 = vld [vmem:[%s7899_s3 + $0x4c] sm:$0xf0]  ;;  %v5276_v56 = vld [vmem:[%s7899_s3 + $0x21c] sm:$0xf] }
 0x12f   : > { %2032 = vmatpush.bf16.msra.mxu2 %v4075_v7  ;;  %2045 = vmatpush.bf16.msra.mxu3 %v4587_v8  ;;  %v3755_v7 = vor.u32 %v5227_v58, %v3752_v59  ;;  %v4267_v8 = vor.u32 %v5355_v60, %v4264_v61  ;;  %v3687_v18 = vor.u32 %v5219_v3, %v3686_v62  ;;  %v3952_v57 = vld [vmem:[%s7899_s3 + $0x258] sm:$0xf0]  ;;  %v3886_v62 = vld [vmem:[%s7899_s3 + $0x198] sm:$0xf] }
 0x130   : > { %v5404_v58 = vld [vmem:[%s7899_s3 + $0x61c] sm:$0xf] }
 0x131   : > { %v4464_v59 = vld [vmem:[%s7899_s3 + $0x658] sm:$0xf0] }
 0x132   : > { %2007 = vmatpush.bf16.msra.mxu0 %v4007_v15  ;;  %2020 = vmatpush.bf16.msra.mxu1 %v4519_v16  ;;  %v4654_v15 = vld [vmem:[%s7899_s3 + $0x798] sm:$0xf]  ;;  %v4467_v3 = vor.u32 %v5404_v58, %v4464_v59  ;;  %v5340_v44 = vld [vmem:[%s7899_s3 + $0x41c] sm:$0xf]  ;;  %v4151_v58 = vor.u32 %v5333_v45, %v4150_v35  ;;  %v3830_v35 = vld [vmem:[%s7899_s3 + $0x120] sm:$0xf] }
 0x133   : > { %2033 = vmatpush.bf16.msra.mxu2 %v4011_v19  ;;  %2046 = vmatpush.bf16.msra.mxu3 %v4523_v20  ;;  %v5460_v16 = vld [vmem:[%s7899_s3 + $0x7d4] sm:$0xf0]  ;;  %v4199_v19 = vor.u32 %v5347_v6, %v4198_v5  ;;  %v4144_v20 = vld [vmem:[%s7899_s3 + $0x3d8] sm:$0xf0]  ;;  %v5253_v45 = vld [vmem:[%s7899_s3 + $0x15c] sm:$0xf0] }
 0x134   : > { %v4655_v27 = vor.u32 %v5460_v16, %v4654_v15  ;;  %v4147_v29 = vor.u32 %v5324_v17, %v4144_v20  ;;  %v4398_v5 = vld [vmem:[%s7899_s3 + $0x598] sm:$0xf]  ;;  %v4403_v16 = vor.u32 %v5388_v9, %v4400_v10  ;;  %v3824_v20 = vld [vmem:[%s7899_s3 + $0x158] sm:$0xf0] }
 0x135   : > { %v5396_v6 = vld [vmem:[%s7899_s3 + $0x5d4] sm:$0xf0]  ;;  %v4208_v34 = vld [vmem:[%s7899_s3 + $0x458] sm:$0xf0] }
 0x136   : > { %2008 = vmatpush.bf16.msra.mxu0 %v3943_v4  ;;  %2021 = vmatpush.bf16.msra.mxu1 %v4455_v28  ;;  %v4078_v4 = vld [vmem:[%s7899_s3 + $0x318] sm:$0xf]  ;;  %v4399_v12 = vor.u32 %v5396_v6, %v4398_v5  ;;  %v5309_v5 = vld [vmem:[%s7899_s3 + $0x324] sm:$0xf] }
 0x137   : > { %2034 = vmatpush.bf16.msra.mxu2 %v3947_v31  ;;  %2047 = vmatpush.bf16.msra.mxu3 %v4459_v32  ;;  %v5316_v28 = vld [vmem:[%s7899_s3 + $0x354] sm:$0xf0]  ;;  %v4088_v6 = vld [vmem:[%s7899_s3 + $0x360] sm:$0xf0] }
 0x138   : > { %1961 = vmatmul.bf16.vlgmr.msrb.gmra.mxu0 %v6242_v50  ;;  %1974 = vmatmul.bf16.vlgmr.msrb.gmra.mxu1 %v6244_v51  ;;  %v4590_v31 = vld [vmem:[%s7899_s3 + $0x718] sm:$0xf]  ;;  %v4079_v38 = vor.u32 %v5316_v28, %v4078_v4  ;;  %v4339_v28 = vor.u32 %v5372_v21, %v4336_v23 }
 0x139   : > { %1987 = vmatmul.bf16.vlgmr.msrb.gmra.mxu2 %v6242_v50  ;;  %2000 = vmatmul.bf16.vlgmr.msrb.gmra.mxu3 %v6244_v51  ;;  %v5444_v32 = vld [vmem:[%s7899_s3 + $0x754] sm:$0xf0] }
 0x13a   : > { %2009 = vmatpush.bf16.msra.mxu0 %v3879_v1  ;;  %2022 = vmatpush.bf16.msra.mxu1 %v4391_v39  ;;  %v4591_v0 = vor.u32 %v5444_v32, %v4590_v31  ;;  %v4014_v1 = vld [vmem:[%s7899_s3 + $0x298] sm:$0xf]  ;;  %v5228_v31 = vld [vmem:[%s7899_s3 + $0x9c] sm:$0xf] }
 0x13b   : > { %2035 = vmatpush.bf16.msra.mxu2 %v3883_v42  ;;  %2048 = vmatpush.bf16.msra.mxu3 %v4395_v43  ;;  %v5300_v39 = vld [vmem:[%s7899_s3 + $0x2d4] sm:$0xf0]  ;;  %v3760_v32 = vld [vmem:[%s7899_s3 + $0xd8] sm:$0xf0] }
 0x13c   : > { %v4526_v42 = vld [vmem:[%s7899_s3 + $0x698] sm:$0xf]  ;;  %v4015_v46 = vor.u32 %v5300_v39, %v4014_v1 }
 0x13d   : > { %v5428_v43 = vld [vmem:[%s7899_s3 + $0x6d4] sm:$0xf0] }
 0x13e   : > { %2010 = vmatpush.bf16.msra.mxu0 %v3815_v48  ;;  %2023 = vmatpush.bf16.msra.mxu1 %v4327_v49  ;;  %v4527_v47 = vor.u32 %v5428_v43, %v4526_v42  ;;  %v3950_v48 = vld [vmem:[%s7899_s3 + $0x218] sm:$0xf]  ;;  %v5212_v42 = vld [vmem:[%s7899_s3 + $0x1c] sm:$0xf] }
 0x13f   : > { %2036 = vmatpush.bf16.msra.mxu2 %v3819_v54  ;;  %2049 = vmatpush.bf16.msra.mxu3 %v4331_v55  ;;  %v5284_v49 = vld [vmem:[%s7899_s3 + $0x254] sm:$0xf0]  ;;  %v3696_v43 = vld [vmem:[%s7899_s3 + $0x58] sm:$0xf0] }
 0x140   : > { %v4462_v54 = vld [vmem:[%s7899_s3 + $0x618] sm:$0xf]  ;;  %v3951_v60 = vor.u32 %v5284_v49, %v3950_v48  ;;  %v5325_v48 = vld [vmem:[%s7899_s3 + $0x3a4] sm:$0xf] }
 0x141   : > { %v5412_v55 = vld [vmem:[%s7899_s3 + $0x654] sm:$0xf0] }
 0x142   : > { %2011 = vmatpush.bf16.msra.mxu0 %v3751_v63  ;;  %2024 = vmatpush.bf16.msra.mxu1 %v4263_v2  ;;  %v4463_v61 = vor.u32 %v5412_v55, %v4462_v54  ;;  %v5268_v63 = vld [vmem:[%s7899_s3 + $0x1d4] sm:$0xf0]  ;;  %v3955_v2 = vor.u32 %v5276_v56, %v3952_v57  ;;  %v5453_v54 = vld [vmem:[%s7899_s3 + $0x7a4] sm:$0xf]  ;;  %v3699_v56 = vor.u32 %v5212_v42, %v3696_v43 }
 0x143   : > { %2037 = vmatpush.bf16.msra.mxu2 %v3755_v7  ;;  %2050 = vmatpush.bf16.msra.mxu3 %v4267_v8  ;;  %v5260_v7 = vld [vmem:[%s7899_s3 + $0x19c] sm:$0xf]  ;;  %v3887_v11 = vor.u32 %v5268_v63, %v3886_v62  ;;  %v4334_v17 = vld [vmem:[%s7899_s3 + $0x518] sm:$0xf]  ;;  %v4664_v55 = vld [vmem:[%s7899_s3 + $0x7e0] sm:$0xf0]  ;;  %v4211_v57 = vor.u32 %v5340_v44, %v4208_v34 }
 0x144   : > { %v3888_v8 = vld [vmem:[%s7899_s3 + $0x1d8] sm:$0xf0]  ;;  %v4206_v1 = vld [vmem:[%s7899_s3 + $0x418] sm:$0xf]  ;;  %v4667_v63 = vor.u32 %v5453_v54, %v4664_v55  ;;  %v5389_v42 = vld [vmem:[%s7899_s3 + $0x5a4] sm:$0xf] }
 0x145   : > { %v3891_v15 = vor.u32 %v5260_v7, %v3888_v8  ;;  %v5348_v39 = vld [vmem:[%s7899_s3 + $0x454] sm:$0xf0]  ;;  %v5437_v7 = vld [vmem:[%s7899_s3 + $0x724] sm:$0xf] }
 0x146   : > { %2012 = vmatpush.bf16.msra.mxu0 %v3687_v18  ;;  %2025 = vmatpush.bf16.msra.mxu1 %v4199_v19  ;;  %v5380_v18 = vld [vmem:[%s7899_s3 + $0x554] sm:$0xf0]  ;;  %v5244_v19 = vld [vmem:[%s7899_s3 + $0x11c] sm:$0xf]  ;;  %v4600_v8 = vld [vmem:[%s7899_s3 + $0x760] sm:$0xf0] }
 0x147   : > { %2038 = vmatpush.bf16.msra.mxu2 %v3691_v24  ;;  %2051 = vmatpush.bf16.msra.mxu3 %v4203_v25  ;;  %v3823_v24 = vor.u32 %v5252_v14, %v3822_v13  ;;  %v4335_v25 = vor.u32 %v5380_v18, %v4334_v17  ;;  %v3827_v4 = vor.u32 %v5244_v19, %v3824_v20  ;;  %v5293_v17 = vld [vmem:[%s7899_s3 + $0x2a4] sm:$0xf] }
 0x148   : > { %v4091_v13 = vor.u32 %v5309_v5, %v4088_v6  ;;  %v4603_v14 = vor.u32 %v5437_v7, %v4600_v8  ;;  %v4024_v18 = vld [vmem:[%s7899_s3 + $0x2e0] sm:$0xf0]  ;;  %v3702_v7 = vld [vmem:[%s7899_s3 + $0x20] sm:$0xf] }
 0x149   : > { %2013 = vmatmul.bf16.vlgmr.msra.gmra.mxu0 %v6242_v50  ;;  %2026 = vmatmul.bf16.vlgmr.msra.gmra.mxu1 %v6244_v51  ;;  %v5421_v19 = vld [vmem:[%s7899_s3 + $0x6a4] sm:$0xf] }
 0x14a   : > { %2057 = vmatpush.bf16.msrb.mxu0 %v4143_v26  ;;  %2070 = vmatpush.bf16.msrb.mxu1 %v4655_v27  ;;  %v3758_v26 = vld [vmem:[%s7899_s3 + $0x98] sm:$0xf]  ;;  %v4536_v20 = vld [vmem:[%s7899_s3 + $0x6e0] sm:$0xf0] }
 0x14b   : > { %2083 = vmatpush.bf16.msrb.mxu2 %v4147_v29  ;;  %2096 = vmatpush.bf16.msrb.mxu3 %v4659_v30  ;;  %v5236_v27 = vld [vmem:[%s7899_s3 + $0xd4] sm:$0xf0]  ;;  %v4408_v43 = vld [vmem:[%s7899_s3 + $0x5e0] sm:$0xf0] }
 0x14c   : > { %2039 = vmatmul.bf16.vlgmr.msra.gmra.mxu2 %v6242_v50  ;;  %2052 = vmatmul.bf16.vlgmr.msra.gmra.mxu3 %v6244_v51  ;;  %v4270_v29 = vld [vmem:[%s7899_s3 + $0x498] sm:$0xf]  ;;  %v3759_v37 = vor.u32 %v5236_v27, %v3758_v26  ;;  %v4027_v26 = vor.u32 %v5293_v17, %v4024_v18  ;;  %v4539_v27 = vor.u32 %v5421_v19, %v4536_v20  ;;  %v5373_v54 = vld [vmem:[%s7899_s3 + $0x524] sm:$0xf]  ;;  %v4158_v19 = vld [vmem:[%s7899_s3 + $0x3a8] sm:$0xf] }
 0x14d   : > { %v5364_v30 = vld [vmem:[%s7899_s3 + $0x4d4] sm:$0xf0]  ;;  %v4344_v55 = vld [vmem:[%s7899_s3 + $0x560] sm:$0xf0]  ;;  %v5334_v20 = vld [vmem:[%s7899_s3 + $0x3e4] sm:$0xf0] }
 0x14e   : > { %2058 = vmatpush.bf16.msrb.mxu0 %v4079_v38  ;;  %2071 = vmatpush.bf16.msrb.mxu1 %v4591_v0  ;;  %v4271_v38 = vor.u32 %v5364_v30, %v4270_v29  ;;  %v5220_v0 = vld [vmem:[%s7899_s3 + $0x54] sm:$0xf0]  ;;  %v5277_v29 = vld [vmem:[%s7899_s3 + $0x224] sm:$0xf] }
 0x14f   : > { %2084 = vmatpush.bf16.msrb.mxu2 %v4083_v40  ;;  %2097 = vmatpush.bf16.msrb.mxu3 %v4595_v41  ;;  %v3763_v40 = vor.u32 %v5228_v31, %v3760_v32  ;;  %v4275_v41 = vor.u32 %v5356_v33, %v4272_v22  ;;  %v3695_v49 = vor.u32 %v5220_v0, %v3694_v36  ;;  %v3960_v30 = vld [vmem:[%s7899_s3 + $0x260] sm:$0xf0]  ;;  %v3894_v36 = vld [vmem:[%s7899_s3 + $0x1a0] sm:$0xf] }
 0x150   : > { %v5405_v31 = vld [vmem:[%s7899_s3 + $0x624] sm:$0xf] }
 0x151   : > { %v4472_v32 = vld [vmem:[%s7899_s3 + $0x660] sm:$0xf0] }
 0x152   : > { %2059 = vmatpush.bf16.msrb.mxu0 %v4015_v46  ;;  %2072 = vmatpush.bf16.msrb.mxu1 %v4527_v47  ;;  %v4662_v46 = vld [vmem:[%s7899_s3 + $0x7a0] sm:$0xf]  ;;  %v4475_v0 = vor.u32 %v5405_v31, %v4472_v32  ;;  %v5357_v5 = vld [vmem:[%s7899_s3 + $0x4a4] sm:$0xf]  ;;  %v4159_v31 = vor.u32 %v5334_v20, %v4158_v19  ;;  %v3838_v19 = vld [vmem:[%s7899_s3 + $0x128] sm:$0xf] }
 0x153   : > { %2085 = vmatpush.bf16.msrb.mxu2 %v4019_v52  ;;  %2098 = vmatpush.bf16.msrb.mxu3 %v4531_v53  ;;  %v5461_v47 = vld [vmem:[%s7899_s3 + $0x7dc] sm:$0xf0]  ;;  %v4207_v52 = vor.u32 %v5348_v39, %v4206_v1  ;;  %v4152_v53 = vld [vmem:[%s7899_s3 + $0x3e0] sm:$0xf0]  ;;  %v5254_v20 = vld [vmem:[%s7899_s3 + $0x164] sm:$0xf0] }
 0x154   : > { %v4663_v59 = vor.u32 %v5461_v47, %v4662_v46  ;;  %v4155_v62 = vor.u32 %v5325_v48, %v4152_v53  ;;  %v4406_v1 = vld [vmem:[%s7899_s3 + $0x5a0] sm:$0xf]  ;;  %v4411_v47 = vor.u32 %v5389_v42, %v4408_v43  ;;  %v3832_v53 = vld [vmem:[%s7899_s3 + $0x160] sm:$0xf0] }
 0x155   : > { %v5397_v39 = vld [vmem:[%s7899_s3 + $0x5dc] sm:$0xf0]  ;;  %v4280_v6 = vld [vmem:[%s7899_s3 + $0x4e0] sm:$0xf0] }
 0x156   : > { %2060 = vmatpush.bf16.msrb.mxu0 %v3951_v60  ;;  %2073 = vmatpush.bf16.msrb.mxu1 %v4463_v61  ;;  %v4086_v60 = vld [vmem:[%s7899_s3 + $0x320] sm:$0xf]  ;;  %v4407_v34 = vor.u32 %v5397_v39, %v4406_v1  ;;  %v5341_v17 = vld [vmem:[%s7899_s3 + $0x424] sm:$0xf]  ;;  %v5310_v1 = vld [vmem:[%s7899_s3 + $0x32c] sm:$0xf] }
 0x157   : > { %2086 = vmatpush.bf16.msrb.mxu2 %v3955_v2  ;;  %2099 = vmatpush.bf16.msrb.mxu3 %v4467_v3  ;;  %v5317_v61 = vld [vmem:[%s7899_s3 + $0x35c] sm:$0xf0]  ;;  %v4216_v18 = vld [vmem:[%s7899_s3 + $0x460] sm:$0xf0]  ;;  %v4096_v39 = vld [vmem:[%s7899_s3 + $0x368] sm:$0xf0] }
 0x158   : > { %v4598_v2 = vld [vmem:[%s7899_s3 + $0x720] sm:$0xf]  ;;  %v4087_v9 = vor.u32 %v5317_v61, %v4086_v60  ;;  %v4347_v61 = vor.u32 %v5373_v54, %v4344_v55 }
 0x159   : > { %v5445_v3 = vld [vmem:[%s7899_s3 + $0x75c] sm:$0xf0] }
 0x15a   : > { %2061 = vmatpush.bf16.msrb.mxu0 %v3887_v11  ;;  %2074 = vmatpush.bf16.msrb.mxu1 %v4399_v12  ;;  %v4599_v10 = vor.u32 %v5445_v3, %v4598_v2  ;;  %v4022_v11 = vld [vmem:[%s7899_s3 + $0x2a0] sm:$0xf]  ;;  %v5229_v2 = vld [vmem:[%s7899_s3 + $0xa4] sm:$0xf] }
 0x15b   : > { %2087 = vmatpush.bf16.msrb.mxu2 %v3891_v15  ;;  %2100 = vmatpush.bf16.msrb.mxu3 %v4403_v16  ;;  %v5301_v12 = vld [vmem:[%s7899_s3 + $0x2dc] sm:$0xf0]  ;;  %v3768_v3 = vld [vmem:[%s7899_s3 + $0xe0] sm:$0xf0] }
 0x15c   : > { %v4534_v15 = vld [vmem:[%s7899_s3 + $0x6a0] sm:$0xf]  ;;  %v4023_v21 = vor.u32 %v5301_v12, %v4022_v11 }
 0x15d   : > { %v5429_v16 = vld [vmem:[%s7899_s3 + $0x6dc] sm:$0xf0] }
 0x15e   : > { %2062 = vmatpush.bf16.msrb.mxu0 %v3823_v24  ;;  %2075 = vmatpush.bf16.msrb.mxu1 %v4335_v25  ;;  %v4535_v23 = vor.u32 %v5429_v16, %v4534_v15  ;;  %v3958_v24 = vld [vmem:[%s7899_s3 + $0x220] sm:$0xf]  ;;  %v5213_v15 = vld [vmem:[%s7899_s3 + $0x24] sm:$0xf] }
 0x15f   : > { %2088 = vmatpush.bf16.msrb.mxu2 %v3827_v4  ;;  %2101 = vmatpush.bf16.msrb.mxu3 %v4339_v28  ;;  %v5285_v25 = vld [vmem:[%s7899_s3 + $0x25c] sm:$0xf0]  ;;  %v3704_v16 = vld [vmem:[%s7899_s3 + $0x60] sm:$0xf0] }
 0x160   : > { %v4470_v4 = vld [vmem:[%s7899_s3 + $0x620] sm:$0xf]  ;;  %v3959_v33 = vor.u32 %v5285_v25, %v3958_v24  ;;  %v5326_v24 = vld [vmem:[%s7899_s3 + $0x3ac] sm:$0xf] }
 0x161   : > { %v5413_v28 = vld [vmem:[%s7899_s3 + $0x65c] sm:$0xf0] }
 0x162   : > { %2063 = vmatpush.bf16.msrb.mxu0 %v3759_v37  ;;  %2076 = vmatpush.bf16.msrb.mxu1 %v4271_v38  ;;  %v4471_v22 = vor.u32 %v5413_v28, %v4470_v4  ;;  %v5269_v37 = vld [vmem:[%s7899_s3 + $0x1dc] sm:$0xf0]  ;;  %v3963_v38 = vor.u32 %v5277_v29, %v3960_v30  ;;  %v5454_v4 = vld [vmem:[%s7899_s3 + $0x7ac] sm:$0xf]  ;;  %v3707_v29 = vor.u32 %v5213_v15, %v3704_v16 }
 0x163   : > { %2089 = vmatpush.bf16.msrb.mxu2 %v3763_v40  ;;  %2102 = vmatpush.bf16.msrb.mxu3 %v4275_v41  ;;  %v5261_v40 = vld [vmem:[%s7899_s3 + $0x1a4] sm:$0xf]  ;;  %v3895_v44 = vor.u32 %v5269_v37, %v3894_v36  ;;  %v4342_v48 = vld [vmem:[%s7899_s3 + $0x520] sm:$0xf]  ;;  %v4672_v28 = vld [vmem:[%s7899_s3 + $0x7e8] sm:$0xf0]  ;;  %v4219_v30 = vor.u32 %v5341_v17, %v4216_v18 }
 0x164   : > { %v3896_v41 = vld [vmem:[%s7899_s3 + $0x1e0] sm:$0xf0]  ;;  %v4214_v11 = vld [vmem:[%s7899_s3 + $0x420] sm:$0xf]  ;;  %v4675_v37 = vor.u32 %v5454_v4, %v4672_v28  ;;  %v5390_v15 = vld [vmem:[%s7899_s3 + $0x5ac] sm:$0xf] }
 0x165   : > { %v3899_v46 = vor.u32 %v5261_v40, %v3896_v41  ;;  %v5349_v12 = vld [vmem:[%s7899_s3 + $0x45c] sm:$0xf0]  ;;  %v5438_v40 = vld [vmem:[%s7899_s3 + $0x72c] sm:$0xf] }
 0x166   : > { %2064 = vmatpush.bf16.msrb.mxu0 %v3695_v49  ;;  %2077 = vmatpush.bf16.msrb.mxu1 %v4207_v52  ;;  %v5381_v49 = vld [vmem:[%s7899_s3 + $0x55c] sm:$0xf0]  ;;  %v5245_v52 = vld [vmem:[%s7899_s3 + $0x124] sm:$0xf]  ;;  %v4608_v41 = vld [vmem:[%s7899_s3 + $0x768] sm:$0xf0] }
 0x167   : > { %2090 = vmatpush.bf16.msrb.mxu2 %v3699_v56  ;;  %2103 = vmatpush.bf16.msrb.mxu3 %v4211_v57  ;;  %v3831_v56 = vor.u32 %v5253_v45, %v3830_v35  ;;  %v4343_v57 = vor.u32 %v5381_v49, %v4342_v48  ;;  %v3835_v60 = vor.u32 %v5245_v52, %v3832_v53  ;;  %v5294_v48 = vld [vmem:[%s7899_s3 + $0x2ac] sm:$0xf] }
 0x168   : > { %v4099_v35 = vor.u32 %v5310_v1, %v4096_v39  ;;  %v4611_v45 = vor.u32 %v5438_v40, %v4608_v41  ;;  %v4032_v49 = vld [vmem:[%s7899_s3 + $0x2e8] sm:$0xf0]  ;;  %v3710_v40 = vld [vmem:[%s7899_s3 + $0x28] sm:$0xf] }
 0x169   : > { %2065 = vmatmul.bf16.vlgmr.msrb.gmra.mxu0 %v6242_v50  ;;  %2078 = vmatmul.bf16.vlgmr.msrb.gmra.mxu1 %v6244_v51  ;;  %v5422_v52 = vld [vmem:[%s7899_s3 + $0x6ac] sm:$0xf] }
 0x16a   : > { %2109 = vmatpush.bf16.msra.mxu0 %v4151_v58  ;;  %2122 = vmatpush.bf16.msra.mxu1 %v4663_v59  ;;  %v3766_v58 = vld [vmem:[%s7899_s3 + $0xa0] sm:$0xf]  ;;  %v4544_v53 = vld [vmem:[%s7899_s3 + $0x6e8] sm:$0xf0] }
 0x16b   : > { %2135 = vmatpush.bf16.msra.mxu2 %v4155_v62  ;;  %2148 = vmatpush.bf16.msra.mxu3 %v4667_v63  ;;  %v5237_v59 = vld [vmem:[%s7899_s3 + $0xdc] sm:$0xf0]  ;;  %v4416_v16 = vld [vmem:[%s7899_s3 + $0x5e8] sm:$0xf0] }
 0x16c   : > { %2091 = vmatmul.bf16.vlgmr.msrb.gmra.mxu2 %v6242_v50  ;;  %2104 = vmatmul.bf16.vlgmr.msrb.gmra.mxu3 %v6244_v51  ;;  %v4278_v62 = vld [vmem:[%s7899_s3 + $0x4a0] sm:$0xf]  ;;  %v3767_v8 = vor.u32 %v5237_v59, %v3766_v58  ;;  %v4035_v58 = vor.u32 %v5294_v48, %v4032_v49  ;;  %v4547_v59 = vor.u32 %v5422_v52, %v4544_v53  ;;  %v5374_v4 = vld [vmem:[%s7899_s3 + $0x52c] sm:$0xf]  ;;  %v4166_v52 = vld [vmem:[%s7899_s3 + $0x3b0] sm:$0xf] }
 0x16d   : > { %v5365_v63 = vld [vmem:[%s7899_s3 + $0x4dc] sm:$0xf0]  ;;  %v4352_v28 = vld [vmem:[%s7899_s3 + $0x568] sm:$0xf0]  ;;  %v5335_v53 = vld [vmem:[%s7899_s3 + $0x3ec] sm:$0xf0] }
 0x16e   : > { %2110 = vmatpush.bf16.msra.mxu0 %v4087_v9  ;;  %2123 = vmatpush.bf16.msra.mxu1 %v4599_v10  ;;  %v4279_v9 = vor.u32 %v5365_v63, %v4278_v62  ;;  %v5221_v10 = vld [vmem:[%s7899_s3 + $0x5c] sm:$0xf0]  ;;  %v5278_v62 = vld [vmem:[%s7899_s3 + $0x22c] sm:$0xf] }
 0x16f   : > { %2136 = vmatpush.bf16.msra.mxu2 %v4091_v13  ;;  %2149 = vmatpush.bf16.msra.mxu3 %v4603_v14  ;;  %v3771_v13 = vor.u32 %v5229_v2, %v3768_v3  ;;  %v4283_v14 = vor.u32 %v5357_v5, %v4280_v6  ;;  %v3703_v25 = vor.u32 %v5221_v10, %v3702_v7  ;;  %v3968_v63 = vld [vmem:[%s7899_s3 + $0x268] sm:$0xf0]  ;;  %v3902_v7 = vld [vmem:[%s7899_s3 + $0x1a8] sm:$0xf] }
 0x170   : > { %v5406_v2 = vld [vmem:[%s7899_s3 + $0x62c] sm:$0xf] }
 0x171   : > { %v4480_v3 = vld [vmem:[%s7899_s3 + $0x668] sm:$0xf0] }
 0x172   : > { %2111 = vmatpush.bf16.msra.mxu0 %v4023_v21  ;;  %2124 = vmatpush.bf16.msra.mxu1 %v4535_v23  ;;  %v4670_v21 = vld [vmem:[%s7899_s3 + $0x7a8] sm:$0xf]  ;;  %v4483_v10 = vor.u32 %v5406_v2, %v4480_v3  ;;  %v5358_v1 = vld [vmem:[%s7899_s3 + $0x4ac] sm:$0xf]  ;;  %v4167_v2 = vor.u32 %v5335_v53, %v4166_v52  ;;  %v5399_v52 = vld [vmem:[%s7899_s3 + $0x5ec] sm:$0xf0] }
 0x173   : > { %2137 = vmatpush.bf16.msra.mxu2 %v4027_v26  ;;  %2150 = vmatpush.bf16.msra.mxu3 %v4539_v27  ;;  %v5462_v23 = vld [vmem:[%s7899_s3 + $0x7e4] sm:$0xf0]  ;;  %v4215_v26 = vor.u32 %v5349_v12, %v4214_v11  ;;  %v4160_v27 = vld [vmem:[%s7899_s3 + $0x3e8] sm:$0xf0]  ;;  %v5263_v53 = vld [vmem:[%s7899_s3 + $0x1b4] sm:$0xf] }
 0x174   : > { %v4671_v32 = vor.u32 %v5462_v23, %v4670_v21  ;;  %v4163_v36 = vor.u32 %v5326_v24, %v4160_v27  ;;  %v4414_v11 = vld [vmem:[%s7899_s3 + $0x5a8] sm:$0xf]  ;;  %v4419_v23 = vor.u32 %v5390_v15, %v4416_v16  ;;  %v3840_v27 = vld [vmem:[%s7899_s3 + $0x168] sm:$0xf0]  ;;  %v4616_v15 = vld [vmem:[%s7899_s3 + $0x770] sm:$0xf0] }
 0x175   : > { %v5398_v12 = vld [vmem:[%s7899_s3 + $0x5e4] sm:$0xf0]  ;;  %v4288_v39 = vld [vmem:[%s7899_s3 + $0x4e8] sm:$0xf0] }
 0x176   : > { %2112 = vmatpush.bf16.msra.mxu0 %v3959_v33  ;;  %2125 = vmatpush.bf16.msra.mxu1 %v4471_v22  ;;  %v4094_v33 = vld [vmem:[%s7899_s3 + $0x328] sm:$0xf]  ;;  %v4415_v18 = vor.u32 %v5398_v12, %v4414_v11  ;;  %v5342_v48 = vld [vmem:[%s7899_s3 + $0x42c] sm:$0xf]  ;;  %v5311_v11 = vld [vmem:[%s7899_s3 + $0x334] sm:$0xf] }
 0x177   : > { %2138 = vmatpush.bf16.msra.mxu2 %v3963_v38  ;;  %2151 = vmatpush.bf16.msra.mxu3 %v4475_v0  ;;  %v5318_v22 = vld [vmem:[%s7899_s3 + $0x364] sm:$0xf0]  ;;  %v4224_v49 = vld [vmem:[%s7899_s3 + $0x468] sm:$0xf0]  ;;  %v7052_v12 = vld [vmem:[%s7900_s4] sm:$0xff] }
 0x178   : > { %v4606_v38 = vld [vmem:[%s7899_s3 + $0x728] sm:$0xf]  ;;  %v4095_v42 = vor.u32 %v5318_v22, %v4094_v33  ;;  %v4355_v22 = vor.u32 %v5374_v4, %v4352_v28  ;;  %v5423_v4 = vld [vmem:[%s7899_s3 + $0x6b4] sm:$0xf] }
 0x179   : > { %v5446_v0 = vld [vmem:[%s7899_s3 + $0x764] sm:$0xf0]  ;;  %v4552_v28 = vld [vmem:[%s7899_s3 + $0x6f0] sm:$0xf0] }
 0x17a   : > { %2113 = vmatpush.bf16.msra.mxu0 %v3895_v44  ;;  %2126 = vmatpush.bf16.msra.mxu1 %v4407_v34  ;;  %v4607_v43 = vor.u32 %v5446_v0, %v4606_v38  ;;  %v4030_v44 = vld [vmem:[%s7899_s3 + $0x2a8] sm:$0xf]  ;;  %v5230_v38 = vld [vmem:[%s7899_s3 + $0xac] sm:$0xf] }
 0x17b   : > { %2139 = vmatpush.bf16.msra.mxu2 %v3899_v46  ;;  %2152 = vmatpush.bf16.msra.mxu3 %v4411_v47  ;;  %v5302_v34 = vld [vmem:[%s7899_s3 + $0x2e4] sm:$0xf0]  ;;  %v3776_v0 = vld [vmem:[%s7899_s3 + $0xe8] sm:$0xf0] }
 0x17c   : > { %v4542_v46 = vld [vmem:[%s7899_s3 + $0x6a8] sm:$0xf]  ;;  %v4031_v54 = vor.u32 %v5302_v34, %v4030_v44 }
 0x17d   : > { %v5430_v47 = vld [vmem:[%s7899_s3 + $0x6e4] sm:$0xf0] }
 0x17e   : > { %2114 = vmatpush.bf16.msra.mxu0 %v3831_v56  ;;  %2127 = vmatpush.bf16.msra.mxu1 %v4343_v57  ;;  %v4543_v55 = vor.u32 %v5430_v47, %v4542_v46  ;;  %v3966_v56 = vld [vmem:[%s7899_s3 + $0x228] sm:$0xf]  ;;  %v5214_v46 = vld [vmem:[%s7899_s3 + $0x2c] sm:$0xf] }
 0x17f   : > { %2140 = vmatpush.bf16.msra.mxu2 %v3835_v60  ;;  %2153 = vmatpush.bf16.msra.mxu3 %v4347_v61  ;;  %v5286_v57 = vld [vmem:[%s7899_s3 + $0x264] sm:$0xf0]  ;;  %v3712_v47 = vld [vmem:[%s7899_s3 + $0x68] sm:$0xf0] }
 0x180   : > { %v4478_v60 = vld [vmem:[%s7899_s3 + $0x628] sm:$0xf]  ;;  %v3967_v5 = vor.u32 %v5286_v57, %v3966_v56  ;;  %v5327_v56 = vld [vmem:[%s7899_s3 + $0x3b4] sm:$0xf] }
 0x181   : > { %v5414_v61 = vld [vmem:[%s7899_s3 + $0x664] sm:$0xf0] }
 0x182   : > { %2115 = vmatpush.bf16.msra.mxu0 %v3767_v8  ;;  %2128 = vmatpush.bf16.msra.mxu1 %v4279_v9  ;;  %v4479_v6 = vor.u32 %v5414_v61, %v4478_v60  ;;  %v5270_v8 = vld [vmem:[%s7899_s3 + $0x1e4] sm:$0xf0]  ;;  %v3971_v9 = vor.u32 %v5278_v62, %v3968_v63  ;;  %v5455_v60 = vld [vmem:[%s7899_s3 + $0x7b4] sm:$0xf]  ;;  %v3715_v62 = vor.u32 %v5214_v46, %v3712_v47  ;;  %v5271_v46 = vld [vmem:[%s7899_s3 + $0x1ec] sm:$0xf0] }
 0x183   : > { %2141 = vmatpush.bf16.msra.mxu2 %v3771_v13  ;;  %2154 = vmatpush.bf16.msra.mxu3 %v4283_v14  ;;  %v5262_v13 = vld [vmem:[%s7899_s3 + $0x1ac] sm:$0xf]  ;;  %v3903_v17 = vor.u32 %v5270_v8, %v3902_v7  ;;  %v4350_v24 = vld [vmem:[%s7899_s3 + $0x528] sm:$0xf]  ;;  %v4680_v61 = vld [vmem:[%s7899_s3 + $0x7f0] sm:$0xf0]  ;;  %v4227_v63 = vor.u32 %v5342_v48, %v4224_v49 }
 0x184   : > { %v3904_v14 = vld [vmem:[%s7899_s3 + $0x1e8] sm:$0xf0]  ;;  %v4222_v44 = vld [vmem:[%s7899_s3 + $0x428] sm:$0xf]  ;;  %v4614_v7 = vld [vmem:[%s7899_s3 + $0x730] sm:$0xf] }
 0x185   : > { %v3907_v21 = vor.u32 %v5262_v13, %v3904_v14  ;;  %v5350_v34 = vld [vmem:[%s7899_s3 + $0x464] sm:$0xf0]  ;;  %v4104_v13 = vld [vmem:[%s7899_s3 + $0x370] sm:$0xf0]  ;;  %v4422_v49 = vld [vmem:[%s7899_s3 + $0x5b0] sm:$0xf] }
 0x186   : > { %2116 = vmatpush.bf16.msra.mxu0 %v3703_v25  ;;  %2129 = vmatpush.bf16.msra.mxu1 %v4215_v26  ;;  %v5382_v25 = vld [vmem:[%s7899_s3 + $0x564] sm:$0xf0]  ;;  %v5246_v26 = vld [vmem:[%s7899_s3 + $0x12c] sm:$0xf]  ;;  %v5439_v14 = vld [vmem:[%s7899_s3 + $0x734] sm:$0xf] }
 0x187   : > { %2142 = vmatpush.bf16.msra.mxu2 %v3707_v29  ;;  %2155 = vmatpush.bf16.msra.mxu3 %v4219_v30  ;;  %v3839_v29 = vor.u32 %v5254_v20, %v3838_v19  ;;  %v4351_v30 = vor.u32 %v5382_v25, %v4350_v24  ;;  %v3843_v33 = vor.u32 %v5246_v26, %v3840_v27  ;;  %v5303_v19 = vld [vmem:[%s7899_s3 + $0x2ec] sm:$0xf0]  ;;  %v589_v20 = vperm.slane %v7052_v12, 0  ;;  %v5295_v26 = vld [vmem:[%s7899_s3 + $0x2b4] sm:$0xf] }
 0x188   : > { %v4550_v24 = vld [vmem:[%s7899_s3 + $0x6b0] sm:$0xf]  ;;  %v4040_v27 = vld [vmem:[%s7899_s3 + $0x2f0] sm:$0xf0] }
 0x189   : > { %2117 = vmatmul.bf16.vlgmr.msra.gmra.mxu0 %v6242_v50  ;;  %2130 = vmatmul.bf16.vlgmr.msra.gmra.mxu1 %v6244_v51  ;;  %v5431_v25 = vld [vmem:[%s7899_s3 + $0x6ec] sm:$0xf0] }
 0x18a   : > { %2161 = vmatpush.bf16.msrb.mxu0 %v4159_v31  ;;  %2174 = vmatpush.bf16.msrb.mxu1 %v4671_v32  ;;  %v3774_v31 = vld [vmem:[%s7899_s3 + $0xa8] sm:$0xf] }
 0x18b   : > { %2187 = vmatpush.bf16.msrb.mxu2 %v4163_v36  ;;  %2200 = vmatpush.bf16.msrb.mxu3 %v4675_v37  ;;  %v5238_v32 = vld [vmem:[%s7899_s3 + $0xe4] sm:$0xf0] }
 0x18c   : > { %2143 = vmatmul.bf16.vlgmr.msra.gmra.mxu2 %v6242_v50  ;;  %2156 = vmatmul.bf16.vlgmr.msra.gmra.mxu3 %v6244_v51  ;;  %v4286_v36 = vld [vmem:[%s7899_s3 + $0x4a8] sm:$0xf]  ;;  %v3775_v41 = vor.u32 %v5238_v32, %v3774_v31  ;;  %v4551_v32 = vor.u32 %v5431_v25, %v4550_v24  ;;  %v5367_v24 = vld [vmem:[%s7899_s3 + $0x4ec] sm:$0xf0]  ;;  %v5231_v25 = vld [vmem:[%s7899_s3 + $0xb4] sm:$0xf] }
 0x18d   : > { %v5366_v37 = vld [vmem:[%s7899_s3 + $0x4e4] sm:$0xf0] }
 0x18e   : > { %2162 = vmatpush.bf16.msrb.mxu0 %v4095_v42  ;;  %2175 = vmatpush.bf16.msrb.mxu1 %v4607_v43  ;;  %v4287_v42 = vor.u32 %v5366_v37, %v4286_v36  ;;  %v5222_v43 = vld [vmem:[%s7899_s3 + $0x64] sm:$0xf0]  ;;  %v5287_v36 = vld [vmem:[%s7899_s3 + $0x26c] sm:$0xf0]  ;;  %v4043_v37 = vor.u32 %v5295_v26, %v4040_v27 }
 0x18f   : > { %2188 = vmatpush.bf16.msrb.mxu2 %v4099_v35  ;;  %2201 = vmatpush.bf16.msrb.mxu3 %v4611_v45  ;;  %v3779_v35 = vor.u32 %v5230_v38, %v3776_v0  ;;  %v4291_v45 = vor.u32 %v5358_v1, %v4288_v39  ;;  %v3711_v57 = vor.u32 %v5222_v43, %v3710_v40  ;;  %v4486_v0 = vld [vmem:[%s7899_s3 + $0x630] sm:$0xf]  ;;  %v5279_v39 = vld [vmem:[%s7899_s3 + $0x234] sm:$0xf] }
 0x190   : > { %v4555_v38 = vor.u32 %v5423_v4, %v4552_v28  ;;  %v5415_v1 = vld [vmem:[%s7899_s3 + $0x66c] sm:$0xf0]  ;;  %v4488_v43 = vld [vmem:[%s7899_s3 + $0x670] sm:$0xf0] }
 0x191   : > { %v3784_v4 = vld [vmem:[%s7899_s3 + $0xf0] sm:$0xf0] }
 0x192   : > { %2163 = vmatpush.bf16.msrb.mxu0 %v4031_v54  ;;  %2176 = vmatpush.bf16.msrb.mxu1 %v4543_v55  ;;  %v4678_v54 = vld [vmem:[%s7899_s3 + $0x7b0] sm:$0xf]  ;;  %v5359_v28 = vld [vmem:[%s7899_s3 + $0x4b4] sm:$0xf] }
 0x193   : > { %2189 = vmatpush.bf16.msrb.mxu2 %v4035_v58  ;;  %2202 = vmatpush.bf16.msrb.mxu3 %v4547_v59  ;;  %v5463_v55 = vld [vmem:[%s7899_s3 + $0x7ec] sm:$0xf0]  ;;  %v4223_v58 = vor.u32 %v5350_v34, %v4222_v44  ;;  %v4168_v59 = vld [vmem:[%s7899_s3 + $0x3f0] sm:$0xf0]  ;;  %v590_v44 = vperm.slane %v7052_v12, 1 }
 0x194   : > { %v4679_v3 = vor.u32 %v5463_v55, %v4678_v54  ;;  %v4171_v8 = vor.u32 %v5327_v56, %v4168_v59  ;;  %v3912_v56 = vld [vmem:[%s7899_s3 + $0x1f0] sm:$0xf0] }
 0x196   : > { %2164 = vmatpush.bf16.msrb.mxu0 %v3967_v5  ;;  %2177 = vmatpush.bf16.msrb.mxu1 %v4479_v6  ;;  %v4102_v5 = vld [vmem:[%s7899_s3 + $0x330] sm:$0xf] }
 0x197   : > { %2190 = vmatpush.bf16.msrb.mxu2 %v3971_v9  ;;  %2203 = vmatpush.bf16.msrb.mxu3 %v4483_v10  ;;  %v5319_v6 = vld [vmem:[%s7899_s3 + $0x36c] sm:$0xf0]  ;;  %v4683_v9 = vor.u32 %v5455_v60, %v4680_v61 }
 0x198   : > { %v5447_v10 = vld [vmem:[%s7899_s3 + $0x76c] sm:$0xf0]  ;;  %v4103_v16 = vor.u32 %v5319_v6, %v4102_v5  ;;  %v3915_v6 = vor.u32 %v5263_v53, %v3912_v56  ;;  %v4176_v53 = vld [vmem:[%s7899_s3 + $0x3f8] sm:$0xf0] }
 0x19a   : > { %2165 = vmatpush.bf16.msrb.mxu0 %v3903_v17  ;;  %2178 = vmatpush.bf16.msrb.mxu1 %v4415_v18  ;;  %v4615_v17 = vor.u32 %v5447_v10, %v4614_v7  ;;  %v4038_v18 = vld [vmem:[%s7899_s3 + $0x2b0] sm:$0xf]  ;;  %v5247_v10 = vld [vmem:[%s7899_s3 + $0x134] sm:$0xf] }
 0x19b   : > { %2191 = vmatpush.bf16.msrb.mxu2 %v3907_v21  ;;  %2204 = vmatpush.bf16.msrb.mxu3 %v4419_v23  ;;  %v4107_v21 = vor.u32 %v5311_v11, %v4104_v13  ;;  %v4619_v23 = vor.u32 %v5439_v14, %v4616_v15  ;;  %v4039_v31 = vor.u32 %v5303_v19, %v4038_v18  ;;  %v3848_v11 = vld [vmem:[%s7899_s3 + $0x170] sm:$0xf0]  ;;  %v5239_v18 = vld [vmem:[%s7899_s3 + $0xec] sm:$0xf0]  ;;  %v591_v19 = vperm.slane %v7052_v12, 2 }
 0x19c   : > { %v5375_v13 = vld [vmem:[%s7899_s3 + $0x534] sm:$0xf] }
 0x19d   : > { %v4360_v14 = vld [vmem:[%s7899_s3 + $0x570] sm:$0xf0] }
 0x19e   : > { %2166 = vmatpush.bf16.msrb.mxu0 %v3839_v29  ;;  %2179 = vmatpush.bf16.msrb.mxu1 %v4351_v30 }
 0x19f   : > { %2192 = vmatpush.bf16.msrb.mxu2 %v3843_v33  ;;  %2205 = vmatpush.bf16.msrb.mxu3 %v4355_v22  ;;  %v3974_v22 = vld [vmem:[%s7899_s3 + $0x230] sm:$0xf] }
 0x1a0   : > { %v3975_v34 = vor.u32 %v5287_v36, %v3974_v22 }
 0x1a2   : > { %2167 = vmatpush.bf16.msrb.mxu0 %v3775_v41  ;;  %2180 = vmatpush.bf16.msrb.mxu1 %v4287_v42  ;;  %v3976_v41 = vld [vmem:[%s7899_s3 + $0x270] sm:$0xf0] }
 0x1a3   : > { %2193 = vmatpush.bf16.msrb.mxu2 %v3779_v35  ;;  %2206 = vmatpush.bf16.msrb.mxu3 %v4291_v45  ;;  %v5407_v42 = vld [vmem:[%s7899_s3 + $0x634] sm:$0xf]  ;;  %v4487_v35 = vor.u32 %v5415_v1, %v4486_v0  ;;  %v3910_v45 = vld [vmem:[%s7899_s3 + $0x1b0] sm:$0xf]  ;;  %v3979_v47 = vor.u32 %v5279_v39, %v3976_v41  ;;  %v3787_v1 = vor.u32 %v5231_v25, %v3784_v4  ;;  %v4048_v25 = vld [vmem:[%s7899_s3 + $0x2f8] sm:$0xf0] }
 0x1a4   : > { %v4491_v48 = vor.u32 %v5407_v42, %v4488_v43  ;;  %v5351_v0 = vld [vmem:[%s7899_s3 + $0x46c] sm:$0xf0]  ;;  %v5215_v41 = vld [vmem:[%s7899_s3 + $0x34] sm:$0xf] }
 0x1a5   : > { %v1910_v29 = vpop.f32.mrf.mxu0  ;;  %v1923_v30 = vpop.f32.mrf.mxu1  ;;  %v3720_v42 = vld [vmem:[%s7899_s3 + $0x70] sm:$0xf0] }
 0x1a6   : > { %2168 = vmatpush.bf16.msrb.mxu0 %v3711_v57  ;;  %2181 = vmatpush.bf16.msrb.mxu1 %v4223_v58  ;;  %v1911_v33 = vadd.f32 %v1910_v29, %v589_v20  ;;  %v5391_v57 = vld [vmem:[%s7899_s3 + $0x5b4] sm:$0xf]  ;;  %v3851_v20 = vor.u32 %v5247_v10, %v3848_v11  ;;  %v3723_v56 = vor.u32 %v5215_v41, %v3720_v42  ;;  %v5312_v10 = vld [vmem:[%s7899_s3 + $0x33c] sm:$0xf] }
 0x1a7   : > { %2194 = vmatpush.bf16.msrb.mxu2 %v3715_v62  ;;  %2207 = vmatpush.bf16.msrb.mxu3 %v4227_v63  ;;  %v4424_v58 = vld [vmem:[%s7899_s3 + $0x5f0] sm:$0xf0]  ;;  %v3911_v62 = vor.u32 %v5271_v46, %v3910_v45  ;;  %v4423_v63 = vor.u32 %v5399_v52, %v4422_v49  ;;  %v5336_v45 = vld [vmem:[%s7899_s3 + $0x3f4] sm:$0xf0]  ;;  %v4112_v11 = vld [vmem:[%s7899_s3 + $0x378] sm:$0xf0] }
 0x1a8   : > { %v7107_v40 = vadd.f32 %v1923_v30, %v1911_v33  ;;  %v4427_v7 = vor.u32 %v5391_v57, %v4424_v58  ;;  %v4296_v29 = vld [vmem:[%s7899_s3 + $0x4f0] sm:$0xf0]  ;;  %v4686_v46 = vld [vmem:[%s7899_s3 + $0x7b8] sm:$0xf]  ;;  %v4496_v41 = vld [vmem:[%s7899_s3 + $0x678] sm:$0xf0] }
 0x1a9   : > { %2169 = vmatmul.bf16.vlgmr.msrb.gmra.mxu0 %v6242_v50  ;;  %2182 = vmatmul.bf16.vlgmr.msrb.gmra.mxu1 %v6244_v51  ;;  %v4299_v39 = vor.u32 %v5359_v28, %v4296_v29  ;;  %v5343_v43 = vld [vmem:[%s7899_s3 + $0x434] sm:$0xf] }
 0x1aa   : > { %2213 = vmatpush.bf16.msra.mxu0 %v4167_v2  ;;  %2226 = vmatpush.bf16.msra.mxu1 %v4679_v3  ;;  %v3846_v2 = vld [vmem:[%s7899_s3 + $0x130] sm:$0xf] }
 0x1ab   : > { %2239 = vmatpush.bf16.msra.mxu2 %v4171_v8  ;;  %2252 = vmatpush.bf16.msra.mxu3 %v4683_v9  ;;  %v5255_v3 = vld [vmem:[%s7899_s3 + $0x16c] sm:$0xf0] }
 0x1ac   : > { %2195 = vmatmul.bf16.vlgmr.msrb.gmra.mxu2 %v6242_v50  ;;  %2208 = vmatmul.bf16.vlgmr.msrb.gmra.mxu3 %v6244_v51  ;;  %v1936_v54 = vpop.f32.mrf.mxu2  ;;  %v1949_v55 = vpop.f32.mrf.mxu3  ;;  %v4358_v8 = vld [vmem:[%s7899_s3 + $0x530] sm:$0xf]  ;;  %v3847_v15 = vor.u32 %v5255_v3, %v3846_v2 }
 0x1ad   : > { %v1937_v59 = vadd.f32 %v1936_v54, %v590_v44  ;;  %v1912_v60 = vpop.f32.mrf.mxu0  ;;  %v1925_v61 = vpop.f32.mrf.mxu1  ;;  %v5383_v9 = vld [vmem:[%s7899_s3 + $0x56c] sm:$0xf0]  ;;  %v5456_v54 = vld [vmem:[%s7899_s3 + $0x7bc] sm:$0xf] }
 0x1ae   : > { %2214 = vmatpush.bf16.msra.mxu0 %v4103_v16  ;;  %2227 = vmatpush.bf16.msra.mxu1 %v4615_v17  ;;  %v4359_v16 = vor.u32 %v5383_v9, %v4358_v8  ;;  %v3782_v17 = vld [vmem:[%s7899_s3 + $0xb0] sm:$0xf]  ;;  %v4622_v8 = vld [vmem:[%s7899_s3 + $0x738] sm:$0xf] }
 0x1af   : > { %2240 = vmatpush.bf16.msra.mxu2 %v4107_v21  ;;  %2253 = vmatpush.bf16.msra.mxu3 %v4619_v23  ;;  %v7149_v5 = vadd.f32 %v1949_v55, %v1937_v59  ;;  %v4363_v21 = vor.u32 %v5375_v13, %v4360_v14  ;;  %v4294_v23 = vld [vmem:[%s7899_s3 + $0x4b0] sm:$0xf]  ;;  %v3783_v33 = vor.u32 %v5239_v18, %v3782_v17  ;;  %v4688_v55 = vld [vmem:[%s7899_s3 + $0x7f8] sm:$0xf0]  ;;  %v5448_v9 = vld [vmem:[%s7899_s3 + $0x774] sm:$0xf0] }
 0x1b0   : > { %v4295_v22 = vor.u32 %v5367_v24, %v4294_v23  ;;  %v4691_v3 = vor.u32 %v5456_v54, %v4688_v55  ;;  %v5440_v13 = vld [vmem:[%s7899_s3 + $0x73c] sm:$0xf]  ;;  %v4046_v17 = vld [vmem:[%s7899_s3 + $0x2b8] sm:$0xf] }
 0x1b1   : > { %v4624_v14 = vld [vmem:[%s7899_s3 + $0x778] sm:$0xf0]  ;;  %v5304_v18 = vld [vmem:[%s7899_s3 + $0x2f4] sm:$0xf0] }
 0x1b2   : > { %2215 = vmatpush.bf16.msra.mxu0 %v4039_v31  ;;  %2228 = vmatpush.bf16.msra.mxu1 %v4551_v32  ;;  %v3718_v32 = vld [vmem:[%s7899_s3 + $0x30] sm:$0xf]  ;;  %v5432_v23 = vld [vmem:[%s7899_s3 + $0x6f4] sm:$0xf0]  ;;  %v5296_v24 = vld [vmem:[%s7899_s3 + $0x2bc] sm:$0xf]  ;;  %v4047_v4 = vor.u32 %v5304_v18, %v4046_v17 }
 0x1b3   : > { %2241 = vmatpush.bf16.msra.mxu2 %v4043_v37  ;;  %2254 = vmatpush.bf16.msra.mxu3 %v4555_v38  ;;  %v5223_v37 = vld [vmem:[%s7899_s3 + $0x6c] sm:$0xf0]  ;;  %v5264_v54 = vld [vmem:[%s7899_s3 + $0x1bc] sm:$0xf] }
 0x1b4   : > { %v1938_v26 = vpop.f32.mrf.mxu2  ;;  %v1951_v27 = vpop.f32.mrf.mxu3  ;;  %v4230_v38 = vld [vmem:[%s7899_s3 + $0x430] sm:$0xf]  ;;  %v3719_v49 = vor.u32 %v5223_v37, %v3718_v32  ;;  %v3982_v32 = vld [vmem:[%s7899_s3 + $0x238] sm:$0xf] }
 0x1b5   : > { %v1962_v30 = vpop.f32.mrf.mxu0  ;;  %v1975_v31 = vpop.f32.mrf.mxu1  ;;  %v4231_v52 = vor.u32 %v5351_v0, %v4230_v38  ;;  %v5424_v26 = vld [vmem:[%s7899_s3 + $0x6bc] sm:$0xf]  ;;  %v4494_v37 = vld [vmem:[%s7899_s3 + $0x638] sm:$0xf] }
 0x1b6   : > { %2216 = vmatpush.bf16.msra.mxu0 %v3975_v34  ;;  %2229 = vmatpush.bf16.msra.mxu1 %v4487_v35  ;;  %v1963_v36 = vadd.f32 %v1962_v30, %v591_v19  ;;  %v4232_v34 = vld [vmem:[%s7899_s3 + $0x470] sm:$0xf0]  ;;  %v4174_v35 = vld [vmem:[%s7899_s3 + $0x3b8] sm:$0xf]  ;;  %v4115_v19 = vor.u32 %v5312_v10, %v4112_v11  ;;  %v4560_v27 = vld [vmem:[%s7899_s3 + $0x6f8] sm:$0xf0] }
 0x1b7   : > { %2242 = vmatpush.bf16.msra.mxu2 %v3979_v47  ;;  %2255 = vmatpush.bf16.msra.mxu3 %v4491_v48  ;;  %v5464_v47 = vld [vmem:[%s7899_s3 + $0x7f4] sm:$0xf0]  ;;  %v5328_v48 = vld [vmem:[%s7899_s3 + $0x3bc] sm:$0xf]  ;;  %v4235_v57 = vor.u32 %v5343_v43, %v4232_v34  ;;  %v4175_v58 = vor.u32 %v5336_v45, %v4174_v35 }
 0x1b8   : > { %v7215_v44 = vadd.f32 %v1975_v31, %v1963_v36  ;;  %v4687_v59 = vor.u32 %v5464_v47, %v4686_v46  ;;  %v4179_v2 = vor.u32 %v5328_v48, %v4176_v53  ;;  %v593_v31 = vperm.slane %v7052_v12, 4  ;;  %v5416_v38 = vld [vmem:[%s7899_s3 + $0x674] sm:$0xf0]  ;;  %v5280_v0 = vld [vmem:[%s7899_s3 + $0x23c] sm:$0xf] }
 0x1b9   : > { %v4563_v36 = vor.u32 %v5424_v26, %v4560_v27  ;;  %v4495_v45 = vor.u32 %v5416_v38, %v4494_v37  ;;  %v3918_v46 = vld [vmem:[%s7899_s3 + $0x1b8] sm:$0xf]  ;;  %v5248_v10 = vld [vmem:[%s7899_s3 + $0x13c] sm:$0xf] }
 0x1ba   : > { %2217 = vmatpush.bf16.msra.mxu0 %v3911_v62  ;;  %2230 = vmatpush.bf16.msra.mxu1 %v4423_v63  ;;  %v4110_v62 = vld [vmem:[%s7899_s3 + $0x338] sm:$0xf] }
 0x1bb   : > { %2243 = vmatpush.bf16.msra.mxu2 %v3915_v6  ;;  %2256 = vmatpush.bf16.msra.mxu3 %v4427_v7  ;;  %v5320_v63 = vld [vmem:[%s7899_s3 + $0x374] sm:$0xf0] }
 0x1bc   : > { %v7244_v60 = vpop.f32.mrf.mxu2  ;;  %v7246_v61 = vpop.f32.mrf.mxu3  ;;  %v5272_v47 = vld [vmem:[%s7899_s3 + $0x1f4] sm:$0xf0] }
 0x1bd   : > { %v1964_v6 = vpop.f32.mrf.mxu0  ;;  %v1977_v7 = vpop.f32.mrf.mxu1  ;;  %v5400_v53 = vld [vmem:[%s7899_s3 + $0x5f4] sm:$0xf0] }
 0x1be   : > { %2218 = vmatpush.bf16.msra.mxu0 %v3847_v15  ;;  %2231 = vmatpush.bf16.msra.mxu1 %v4359_v16  ;;  %v4111_v15 = vor.u32 %v5320_v63, %v4110_v62  ;;  %v4623_v16 = vor.u32 %v5448_v9, %v4622_v8  ;;  %v3919_v62 = vor.u32 %v5272_v47, %v3918_v46  ;;  %v4366_v8 = vld [vmem:[%s7899_s3 + $0x538] sm:$0xf] }
 0x1bf   : > { %2244 = vmatpush.bf16.msra.mxu2 %v3851_v20  ;;  %2257 = vmatpush.bf16.msra.mxu3 %v4363_v21  ;;  %v4627_v20 = vor.u32 %v5440_v13, %v4624_v14  ;;  %v4558_v21 = vld [vmem:[%s7899_s3 + $0x6b8] sm:$0xf]  ;;  %v3856_v14 = vld [vmem:[%s7899_s3 + $0x178] sm:$0xf0] }
 0x1c0   : > { %v4559_v28 = vor.u32 %v5432_v23, %v4558_v21  ;;  %v5384_v9 = vld [vmem:[%s7899_s3 + $0x574] sm:$0xf0]  ;;  %v3859_v26 = vor.u32 %v5248_v10, %v3856_v14  ;;  %v5493_v10 = vld [vmem:[%s7901_s5 + $0xe0] sm:$0xff] }
 0x1c1   : > { %v4367_v21 = vor.u32 %v5384_v9, %v4366_v8  ;;  %v3790_v23 = vld [vmem:[%s7899_s3 + $0xb8] sm:$0xf]  ;;  %v5477_v8 = vld [vmem:[%s7901_s5 + $0x60] sm:$0xff] }
 0x1c2   : > { %2219 = vmatpush.bf16.msra.mxu0 %v3783_v33  ;;  %2232 = vmatpush.bf16.msra.mxu1 %v4295_v22  ;;  %v5288_v33 = vld [vmem:[%s7899_s3 + $0x274] sm:$0xf0]  ;;  %v4051_v22 = vor.u32 %v5296_v24, %v4048_v25  ;;  %v5485_v9 = vld [vmem:[%s7901_s5 + $0xa0] sm:$0xff] }
 0x1c3   : > { %2245 = vmatpush.bf16.msra.mxu2 %v3787_v1  ;;  %2258 = vmatpush.bf16.msra.mxu3 %v4299_v39  ;;  %v3984_v1 = vld [vmem:[%s7899_s3 + $0x278] sm:$0xf0]  ;;  %v3983_v35 = vor.u32 %v5288_v33, %v3982_v32  ;;  %v5240_v24 = vld [vmem:[%s7899_s3 + $0xf4] sm:$0xf0] }
 0x1c4   : > { %v1990_v29 = vpop.f32.mrf.mxu2  ;;  %v2003_v30 = vpop.f32.mrf.mxu3  ;;  %v5408_v39 = vld [vmem:[%s7899_s3 + $0x63c] sm:$0xf]  ;;  %v3987_v48 = vor.u32 %v5280_v0, %v3984_v1  ;;  %v3791_v33 = vor.u32 %v5240_v24, %v3790_v23  ;;  %v5224_v37 = vld [vmem:[%s7899_s3 + $0x74] sm:$0xf0]  ;;  %v5475_v23 = vld [vmem:[%s7901_s5 + $0x50] sm:$0xff] }
 0x1c5   : > { %v5232_v29 = vld [vmem:[%s7899_s3 + $0xbc] sm:$0xf]  ;;  %v4238_v1 = vld [vmem:[%s7899_s3 + $0x438] sm:$0xf]  ;;  %v5483_v24 = vld [vmem:[%s7901_s5 + $0x90] sm:$0xff] }
 0x1c6   : > { %2220 = vmatpush.bf16.msra.mxu0 %v3719_v49  ;;  %2233 = vmatpush.bf16.msra.mxu1 %v4231_v52  ;;  %v2014_v42 = vpop.f32.mrf.mxu0  ;;  %v2027_v43 = vpop.f32.mrf.mxu1  ;;  %v4499_v49 = vor.u32 %v5408_v39, %v4496_v41  ;;  %v4430_v52 = vld [vmem:[%s7899_s3 + $0x5b8] sm:$0xf]  ;;  %v3792_v30 = vld [vmem:[%s7899_s3 + $0xf8] sm:$0xf0] }
 0x1c7   : > { %2246 = vmatpush.bf16.msra.mxu2 %v3723_v56  ;;  %2259 = vmatpush.bf16.msra.mxu3 %v4235_v57  ;;  %v2015_v34 = vadd.f32 %v2014_v42, %v593_v31  ;;  %v3920_v56 = vld [vmem:[%s7899_s3 + $0x1f8] sm:$0xf0]  ;;  %v4431_v63 = vor.u32 %v5400_v53, %v4430_v52  ;;  %v3795_v38 = vor.u32 %v5232_v29, %v3792_v30  ;;  %v5352_v39 = vld [vmem:[%s7899_s3 + $0x474] sm:$0xf0]  ;;  %v5482_v29 = vld [vmem:[%s7901_s5 + $0x88] sm:$0xff] }
 0x1c8   : > { %v5392_v57 = vld [vmem:[%s7899_s3 + $0x5bc] sm:$0xf]  ;;  %v3923_v6 = vor.u32 %v5264_v54, %v3920_v56  ;;  %v4239_v47 = vor.u32 %v5352_v39, %v4238_v1  ;;  %v2319_v39 = vmax.f32 %v7215_v44, 0.0  ;;  %v5503_v44 = vld [vmem:[%s7901_s5 + $0x130] sm:$0xff] }
 0x1c9   : > { %2221 = vmatmul.bf16.vlgmr.msra.gmra.mxu0 %v6242_v50  ;;  %2234 = vmatmul.bf16.vlgmr.msra.gmra.mxu1 %v6244_v51  ;;  %v7340_v55 = vadd.f32 %v2027_v43, %v2015_v34  ;;  %v5360_v31 = vld [vmem:[%s7899_s3 + $0x4bc] sm:$0xf] }
 0x1ca   : > { %2265 = vmatpush.bf16.msrb.mxu0 %v4175_v58  ;;  %2278 = vmatpush.bf16.msrb.mxu1 %v4687_v59  ;;  %v4432_v58 = vld [vmem:[%s7899_s3 + $0x5f8] sm:$0xf0]  ;;  %v594_v59 = vperm.slane %v7052_v12, 5 }
 0x1cb   : > { %2291 = vmatpush.bf16.msrb.mxu2 %v4179_v2  ;;  %2304 = vmatpush.bf16.msrb.mxu3 %v4691_v3  ;;  %v3854_v2 = vld [vmem:[%s7899_s3 + $0x138] sm:$0xf]  ;;  %v4435_v7 = vor.u32 %v5392_v57, %v4432_v58  ;;  %v4304_v32 = vld [vmem:[%s7899_s3 + $0x4f8] sm:$0xf0]  ;;  %v5471_v57 = vld [vmem:[%s7901_s5 + $0x30] sm:$0xff] }
 0x1cc   : > { %2247 = vmatmul.bf16.vlgmr.msra.gmra.mxu2 %v6242_v50  ;;  %2260 = vmatmul.bf16.vlgmr.msra.gmra.mxu3 %v6244_v51  ;;  %v5256_v3 = vld [vmem:[%s7899_s3 + $0x174] sm:$0xf0]  ;;  %v4307_v0 = vor.u32 %v5360_v31, %v4304_v32  ;;  %v5216_v41 = vld [vmem:[%s7899_s3 + $0x3c] sm:$0xf]  ;;  %v5479_v58 = vld [vmem:[%s7901_s5 + $0x70] sm:$0xff] }
 0x1cd   : > { %v3728_v34 = vld [vmem:[%s7899_s3 + $0x78] sm:$0xf0] }
 0x1ce   : > { %2266 = vmatpush.bf16.msrb.mxu0 %v4111_v15  ;;  %2279 = vmatpush.bf16.msrb.mxu1 %v4623_v16  ;;  %v5376_v15 = vld [vmem:[%s7899_s3 + $0x53c] sm:$0xf]  ;;  %v2016_v18 = vpop.f32.mrf.mxu0 }
 0x1cf   : > { %2292 = vmatpush.bf16.msrb.mxu2 %v4115_v19  ;;  %2305 = vmatpush.bf16.msrb.mxu3 %v4627_v20  ;;  %v2040_v11 = vpop.f32.mrf.mxu2  ;;  %v2053_v13 = vpop.f32.mrf.mxu3  ;;  %v4368_v16 = vld [vmem:[%s7899_s3 + $0x578] sm:$0xf0]  ;;  %v3855_v20 = vor.u32 %v5256_v3, %v3854_v2  ;;  %v5478_v2 = vld [vmem:[%s7901_s5 + $0x68] sm:$0xff]  ;;  %v592_v18 = vperm.slane %v7052_v12, 3 }
 0x1d0   : > { %v2041_v17 = vadd.f32 %v2040_v11, %v594_v59  ;;  %v2029_v19 = vpop.f32.mrf.mxu1  ;;  %v4371_v27 = vor.u32 %v5376_v15, %v4368_v16  ;;  %v5472_v52 = vld [vmem:[%s7901_s5 + $0x38] sm:$0xff]  ;;  %v5487_v59 = vld [vmem:[%s7901_s5 + $0xb0] sm:$0xff]  ;;  %v5486_v3 = vld [vmem:[%s7901_s5 + $0xa8] sm:$0xff] }
 0x1d1   : > { %v5480_v53 = vld [vmem:[%s7901_s5 + $0x78] sm:$0xff] }
 0x1d2   : > { %2267 = vmatpush.bf16.msrb.mxu0 %v4047_v4  ;;  %2280 = vmatpush.bf16.msrb.mxu1 %v4559_v28  ;;  %v7382_v25 = vadd.f32 %v2053_v13, %v2041_v17  ;;  %v4302_v4 = vld [vmem:[%s7899_s3 + $0x4b8] sm:$0xf] }
 0x1d3   : > { %2293 = vmatpush.bf16.msrb.mxu2 %v4051_v22  ;;  %2306 = vmatpush.bf16.msrb.mxu3 %v4563_v36  ;;  %v5368_v28 = vld [vmem:[%s7899_s3 + $0x4f4] sm:$0xf0] }
 0x1d4   : > { %v4303_v22 = vor.u32 %v5368_v28, %v4302_v4  ;;  %v3726_v36 = vld [vmem:[%s7899_s3 + $0x38] sm:$0xf]  ;;  %v5466_v4 = vld [vmem:[%s7901_s5 + $0x8] sm:$0xff] }
 0x1d5   : > { %v3727_v46 = vor.u32 %v5224_v37, %v3726_v36  ;;  %v5488_v54 = vld [vmem:[%s7901_s5 + $0xb8] sm:$0xff]  ;;  %v5474_v28 = vld [vmem:[%s7901_s5 + $0x48] sm:$0xff]  ;;  %v5481_v36 = vld [vmem:[%s7901_s5 + $0x80] sm:$0xff]  ;;  %v2317_v37 = vmax.f32 %v7107_v40, 0.0 }
 0x1d6   : > { %2268 = vmatpush.bf16.msrb.mxu0 %v3983_v35  ;;  %2281 = vmatpush.bf16.msrb.mxu1 %v4495_v45  ;;  %v5344_v35 = vld [vmem:[%s7899_s3 + $0x43c] sm:$0xf] }
 0x1d7   : > { %2294 = vmatpush.bf16.msrb.mxu2 %v3987_v48  ;;  %2307 = vmatpush.bf16.msrb.mxu3 %v4499_v49  ;;  %v2042_v42 = vpop.f32.mrf.mxu2  ;;  %v2055_v43 = vpop.f32.mrf.mxu3  ;;  %v4240_v45 = vld [vmem:[%s7899_s3 + $0x478] sm:$0xf0]  ;;  %v3731_v48 = vor.u32 %v5216_v41, %v3728_v34  ;;  %v5511_v34 = vld [vmem:[%s7901_s5 + $0x170] sm:$0xff] }
 0x1d8   : > { %v4243_v49 = vor.u32 %v5344_v35, %v4240_v45  ;;  %v5496_v56 = vld [vmem:[%s7901_s5 + $0xf8] sm:$0xff]  ;;  %v2335_v35 = vpack.c.bf16 %v2319_v39, %v2319_v39  ;;  %v5551_v39 = vld [vmem:[%s7901_s5 + $0x2b0] sm:$0xff] }
 0x1d9   : > { %v5468_v11 = vld [vmem:[%s7901_s5 + $0x18] sm:$0xff] }
 0x1da   : > { %2269 = vmatpush.bf16.msrb.mxu0 %v3919_v62  ;;  %2282 = vmatpush.bf16.msrb.mxu1 %v4431_v63  ;;  %v5495_v62 = vld [vmem:[%s7901_s5 + $0xf0] sm:$0xff]  ;;  %v5470_v63 = vld [vmem:[%s7901_s5 + $0x28] sm:$0xff]  ;;  %v5476_v13 = vld [vmem:[%s7901_s5 + $0x58] sm:$0xff] }
 0x1db   : > { %2295 = vmatpush.bf16.msrb.mxu2 %v3923_v6  ;;  %2308 = vmatpush.bf16.msrb.mxu3 %v4435_v7  ;;  %v5469_v7 = vld [vmem:[%s7901_s5 + $0x20] sm:$0xff]  ;;  %v5484_v14 = vld [vmem:[%s7901_s5 + $0x98] sm:$0xff] }
 0x1dc   : > { %v5492_v15 = vld [vmem:[%s7901_s5 + $0xd8] sm:$0xff] }
 0x1dd   : > { %v5512_v1 = vld [vmem:[%s7901_s5 + $0x178] sm:$0xff] }
 0x1de   : > { %2270 = vmatpush.bf16.msrb.mxu0 %v3855_v20  ;;  %2283 = vmatpush.bf16.msrb.mxu1 %v4367_v21  ;;  %v5467_v21 = vld [vmem:[%s7901_s5 + $0x10] sm:$0xff]  ;;  %v5520_v42 = vld [vmem:[%s7901_s5 + $0x1b8] sm:$0xff] }
 0x1df   : > { %2296 = vmatpush.bf16.msrb.mxu2 %v3859_v26  ;;  %2309 = vmatpush.bf16.msrb.mxu3 %v4371_v27  ;;  %v5491_v26 = vld [vmem:[%s7901_s5 + $0xd0] sm:$0xff]  ;;  %v1989_v27 = vadd.f32 %v7244_v60, %v592_v18  ;;  %v5490_v60 = vld [vmem:[%s7901_s5 + $0xc8] sm:$0xff]  ;;  %v5528_v40 = vld [vmem:[%s7901_s5 + $0x1f8] sm:$0xff] }
 0x1e0   : > { %v5515_v18 = vld [vmem:[%s7901_s5 + $0x190] sm:$0xff] }
 0x1e1   : > { %v2002_v32 = vadd.f32 %v7246_v61, %v1989_v27  ;;  %v5489_v61 = vld [vmem:[%s7901_s5 + $0xc0] sm:$0xff] }
 0x1e2   : > { %2271 = vmatpush.bf16.msrb.mxu0 %v3791_v33  ;;  %2284 = vmatpush.bf16.msrb.mxu1 %v4303_v22  ;;  %v5465_v33 = vld [vmem:[%s7901_s5] sm:$0xff] }
 0x1e3   : > { %2297 = vmatpush.bf16.msrb.mxu2 %v3795_v38  ;;  %2310 = vmatpush.bf16.msrb.mxu3 %v4307_v0  ;;  %v5473_v22 = vld [vmem:[%s7901_s5 + $0x40] sm:$0xff]  ;;  %v2318_v38 = vmax.f32 %v7149_v5, 0.0  ;;  %v5504_v0 = vld [vmem:[%s7901_s5 + $0x138] sm:$0xff]  ;;  %v2320_v41 = vmax.f32 %v2002_v32, 0.0  ;;  %v2333_v5 = vpack.c.bf16 %v2317_v37, %v2317_v37  ;;  %v5535_v37 = vld [vmem:[%s7901_s5 + $0x230] sm:$0xff] }
 0x1e4   : > { %v5544_v32 = vld [vmem:[%s7901_s5 + $0x278] sm:$0xff] }
 0x1e5   : > { %v2334_v43 = vpack.c.bf16 %v2318_v38, %v2318_v38  ;;  %v2336_v45 = vpack.c.bf16 %v2320_v41, %v2320_v41  ;;  %v5543_v38 = vld [vmem:[%s7901_s5 + $0x270] sm:$0xff] }
 0x1e6   : > { %2272 = vmatpush.bf16.msrb.mxu0 %v3727_v46  ;;  %2285 = vmatpush.bf16.msrb.mxu1 %v4239_v47  ;;  %v7468_v6 = vpop.f32.mrf.mxu1  ;;  %v5519_v46 = vld [vmem:[%s7901_s5 + $0x1b0] sm:$0xff] }
 0x1e7   : > { %2298 = vmatpush.bf16.msrb.mxu2 %v3731_v48  ;;  %2311 = vmatpush.bf16.msrb.mxu3 %v4243_v49  ;;  %v5527_v47 = vld [vmem:[%s7901_s5 + $0x1f0] sm:$0xff]  ;;  %v5502_v48 = vld [vmem:[%s7901_s5 + $0x128] sm:$0xff] }
 0x1e8   : > { %v5510_v49 = vld [vmem:[%s7901_s5 + $0x168] sm:$0xff]  ;;  %v5559_v41 = vld [vmem:[%s7901_s5 + $0x2f0] sm:$0xff] }
 0x1e9   : > { %2273 = vmatmul.bf16.vlgmr.msrb.gmra.mxu0 %v6242_v50  ;;  %2286 = vmatmul.bf16.vlgmr.msrb.gmra.mxu1 %v6244_v51 }
 0x1ea   : > { %3377 = vmatpush.bf16.msra.mxu0 %v5472_v52  ;;  %3390 = vmatpush.bf16.msra.mxu1 %v5480_v53  ;;  %v5518_v52 = vld [vmem:[%s7901_s5 + $0x1a8] sm:$0xff] }
 0x1eb   : > { %3403 = vmatpush.bf16.msra.mxu2 %v5488_v54  ;;  %3416 = vmatpush.bf16.msra.mxu3 %v5496_v56  ;;  %v5526_v53 = vld [vmem:[%s7901_s5 + $0x1e8] sm:$0xff] }
 0x1ec   : > { %2299 = vmatmul.bf16.vlgmr.msrb.gmra.mxu2 %v6242_v50  ;;  %2312 = vmatmul.bf16.vlgmr.msrb.gmra.mxu3 %v6244_v51  ;;  %v5494_v50 = vld [vmem:[%s7901_s5 + $0xe8] sm:$0xff]  ;;  %v7466_v51 = vpop.f32.mrf.mxu0 }
 0x1ee   : > { %3378 = vmatpush.bf16.msra.mxu0 %v5471_v57  ;;  %3391 = vmatpush.bf16.msra.mxu1 %v5479_v58  ;;  %v2081_v20 = vpop.f32.mrf.mxu1  ;;  %v5501_v57 = vld [vmem:[%s7901_s5 + $0x120] sm:$0xff] }
 0x1ef   : > { %3404 = vmatpush.bf16.msra.mxu2 %v5487_v59  ;;  %3417 = vmatpush.bf16.msra.mxu3 %v5495_v62  ;;  %v7494_v16 = vpop.f32.mrf.mxu2  ;;  %v7496_v17 = vpop.f32.mrf.mxu3  ;;  %v5509_v58 = vld [vmem:[%s7901_s5 + $0x160] sm:$0xff] }
 0x1f0   : > { %v5517_v59 = vld [vmem:[%s7901_s5 + $0x1a0] sm:$0xff] }
 0x1f1   : > { %v5525_v62 = vld [vmem:[%s7901_s5 + $0x1e0] sm:$0xff] }
 0x1f2   : > { %3379 = vmatpush.bf16.msra.mxu0 %v5470_v63  ;;  %3392 = vmatpush.bf16.msra.mxu1 %v5478_v2  ;;  %v5500_v63 = vld [vmem:[%s7901_s5 + $0x118] sm:$0xff] }
 0x1f3   : > { %3405 = vmatpush.bf16.msra.mxu2 %v5486_v3  ;;  %3418 = vmatpush.bf16.msra.mxu3 %v5494_v50  ;;  %v5508_v2 = vld [vmem:[%s7901_s5 + $0x158] sm:$0xff] }
 0x1f4   : > { %v2068_v19 = vpop.f32.mrf.mxu0  ;;  %v5516_v3 = vld [vmem:[%s7901_s5 + $0x198] sm:$0xff] }
 0x1f5   : > { %v5524_v50 = vld [vmem:[%s7901_s5 + $0x1d8] sm:$0xff] }
 0x1f6   : > { %3380 = vmatpush.bf16.msra.mxu0 %v5469_v7  ;;  %3393 = vmatpush.bf16.msra.mxu1 %v5477_v8 }
 0x1f7   : > { %3406 = vmatpush.bf16.msra.mxu2 %v5485_v9  ;;  %3419 = vmatpush.bf16.msra.mxu3 %v5493_v10  ;;  %v2094_v30 = vpop.f32.mrf.mxu2  ;;  %v2107_v31 = vpop.f32.mrf.mxu3  ;;  %v595_v9 = vperm.slane %v7052_v12, 6  ;;  %v596_v10 = vperm.slane %v7052_v12, 7  ;;  %v5523_v12 = vld [vmem:[%s7901_s5 + $0x1d0] sm:$0xff] }
 0x1f8   : > { %v2322_v30 = vmax.f32 %v7382_v25, 0.0  ;;  %v5536_v31 = vld [vmem:[%s7901_s5 + $0x238] sm:$0xff] }
 0x1f9   : > { %v2067_v19 = vadd.f32 %v7466_v51, %v595_v9  ;;  %v2093_v20 = vadd.f32 %v7494_v16, %v596_v10  ;;  %v5522_v51 = vld [vmem:[%s7901_s5 + $0x1c8] sm:$0xff]  ;;  %v5531_v10 = vld [vmem:[%s7901_s5 + $0x210] sm:$0xff] }
 0x1fa   : > { %3381 = vmatpush.bf16.msra.mxu0 %v5468_v11  ;;  %3394 = vmatpush.bf16.msra.mxu1 %v5476_v13 }
 0x1fb   : > { %3407 = vmatpush.bf16.msra.mxu2 %v5484_v14  ;;  %3420 = vmatpush.bf16.msra.mxu3 %v5492_v15  ;;  %v5499_v14 = vld [vmem:[%s7901_s5 + $0x110] sm:$0xff]  ;;  %v2080_v27 = vadd.f32 %v7468_v6, %v2067_v19  ;;  %v5521_v6 = vld [vmem:[%s7901_s5 + $0x1c0] sm:$0xff] }
 0x1fc   : > { %v5507_v15 = vld [vmem:[%s7901_s5 + $0x150] sm:$0xff] }
 0x1fe   : > { %3382 = vmatpush.bf16.msra.mxu0 %v5467_v21  ;;  %3395 = vmatpush.bf16.msra.mxu1 %v5475_v23  ;;  %v5498_v21 = vld [vmem:[%s7901_s5 + $0x108] sm:$0xff] }
 0x1ff   : > { %3408 = vmatpush.bf16.msra.mxu2 %v5483_v24  ;;  %3421 = vmatpush.bf16.msra.mxu3 %v5491_v26  ;;  %v5506_v23 = vld [vmem:[%s7901_s5 + $0x148] sm:$0xff] }
 0x200   : > { %v5514_v24 = vld [vmem:[%s7901_s5 + $0x188] sm:$0xff] }
 0x202   : > { %3383 = vmatpush.bf16.msra.mxu0 %v5466_v4  ;;  %3396 = vmatpush.bf16.msra.mxu1 %v5474_v28  ;;  %v2106_v4 = vadd.f32 %v7496_v17, %v2093_v20  ;;  %v5497_v28 = vld [vmem:[%s7901_s5 + $0x100] sm:$0xff]  ;;  %v2321_v17 = vmax.f32 %v7340_v55, 0.0  ;;  %v5560_v55 = vld [vmem:[%s7901_s5 + $0x2f8] sm:$0xff] }
 0x203   : > { %3409 = vmatpush.bf16.msra.mxu2 %v5482_v29  ;;  %3422 = vmatpush.bf16.msra.mxu3 %v5490_v60  ;;  %v5505_v29 = vld [vmem:[%s7901_s5 + $0x140] sm:$0xff] }
 0x204   : > { %v5513_v60 = vld [vmem:[%s7901_s5 + $0x180] sm:$0xff]  ;;  %v2337_v25 = vpack.c.bf16 %v2321_v17, %v2321_v17 }
 0x206   : > { %3384 = vmatpush.bf16.msra.mxu0 %v5465_v33  ;;  %3397 = vmatpush.bf16.msra.mxu1 %v5473_v22  ;;  %v7576_v54 = vpop.f32.mrf.mxu0  ;;  %v7578_v56 = vpop.f32.mrf.mxu1  ;;  %v2323_v33 = vmax.f32 %v2080_v27, 0.0  ;;  %v2324_v22 = vmax.f32 %v2106_v4, 0.0 }
 0x207   : > { %3410 = vmatpush.bf16.msra.mxu2 %v5481_v36  ;;  %3423 = vmatpush.bf16.msra.mxu3 %v5489_v61  ;;  %v5552_v36 = vld [vmem:[%s7901_s5 + $0x2b8] sm:$0xff]  ;;  %v2338_v61 = vpack.c.bf16 %v2322_v30, %v2322_v30 }
 0x208   : > { %v5568_v30 = vld [vmem:[%s7901_s5 + $0x338] sm:$0xff] }
 0x209   : > { %3385 = vmatmul.bf16.vlgmr.msra.gmra.mxu0 %v2333_v5  ;;  %3398 = vmatmul.bf16.vlgmr.msra.gmra.mxu1 %v2334_v43  ;;  %v5550_v5 = vld [vmem:[%s7901_s5 + $0x2a8] sm:$0xff] }
 0x20a   : > { %3429 = vmatpush.bf16.msrb.mxu0 %v5504_v0  ;;  %3442 = vmatpush.bf16.msrb.mxu1 %v5512_v1  ;;  %v2339_v0 = vpack.c.bf16 %v2323_v33, %v2323_v33  ;;  %v2340_v1 = vpack.c.bf16 %v2324_v22, %v2324_v22  ;;  %v5558_v43 = vld [vmem:[%s7901_s5 + $0x2e8] sm:$0xff]  ;;  %v5584_v22 = vld [vmem:[%s7901_s5 + $0x3b8] sm:$0xff] }
 0x20b   : > { %3455 = vmatpush.bf16.msrb.mxu2 %v5520_v42  ;;  %3468 = vmatpush.bf16.msrb.mxu3 %v5528_v40  ;;  %v5534_v42 = vld [vmem:[%s7901_s5 + $0x228] sm:$0xff] }
 0x20c   : > { %3411 = vmatmul.bf16.vlgmr.msra.gmra.mxu2 %v2335_v35  ;;  %3424 = vmatmul.bf16.vlgmr.msra.gmra.mxu3 %v2336_v45  ;;  %v5542_v40 = vld [vmem:[%s7901_s5 + $0x268] sm:$0xff]  ;;  %v5533_v35 = vld [vmem:[%s7901_s5 + $0x220] sm:$0xff] }
 0x20d   : > { %v5541_v45 = vld [vmem:[%s7901_s5 + $0x260] sm:$0xff] }
 0x20e   : > { %3430 = vmatpush.bf16.msrb.mxu0 %v5503_v44  ;;  %3443 = vmatpush.bf16.msrb.mxu1 %v5511_v34  ;;  %v2120_v11 = vpop.f32.mrf.mxu0  ;;  %v2133_v13 = vpop.f32.mrf.mxu1 }
 0x20f   : > { %3456 = vmatpush.bf16.msrb.mxu2 %v5519_v46  ;;  %3469 = vmatpush.bf16.msrb.mxu3 %v5527_v47  ;;  %v7604_v7 = vpop.f32.mrf.mxu2  ;;  %v7606_v8 = vpop.f32.mrf.mxu3  ;;  %v5549_v46 = vld [vmem:[%s7901_s5 + $0x2a0] sm:$0xff]  ;;  %v5539_v11 = vld [vmem:[%s7901_s5 + $0x250] sm:$0xff] }
 0x210   : > { %v5557_v47 = vld [vmem:[%s7901_s5 + $0x2e0] sm:$0xff] }
 0x212   : > { %3431 = vmatpush.bf16.msrb.mxu0 %v5502_v48  ;;  %3444 = vmatpush.bf16.msrb.mxu1 %v5510_v49  ;;  %v7703_v48 = vld [vmem:[%s7900_s4 + $0x8] sm:$0xff]  ;;  %v5532_v49 = vld [vmem:[%s7901_s5 + $0x218] sm:$0xff] }
 0x213   : > { %3457 = vmatpush.bf16.msrb.mxu2 %v5518_v52  ;;  %3470 = vmatpush.bf16.msrb.mxu3 %v5526_v53  ;;  %v5540_v52 = vld [vmem:[%s7901_s5 + $0x258] sm:$0xff]  ;;  %v597_v53 = vperm.slane %v7703_v48, 0 }
 0x215   : > { %v2119_v13 = vadd.f32 %v7576_v54, %v597_v53  ;;  %v5530_v54 = vld [vmem:[%s7901_s5 + $0x208] sm:$0xff] }
 0x216   : > { %3432 = vmatpush.bf16.msrb.mxu0 %v5501_v57  ;;  %3445 = vmatpush.bf16.msrb.mxu1 %v5509_v58  ;;  %v598_v57 = vperm.slane %v7703_v48, 1  ;;  %v5548_v58 = vld [vmem:[%s7901_s5 + $0x298] sm:$0xff] }
 0x217   : > { %3458 = vmatpush.bf16.msrb.mxu2 %v5517_v59  ;;  %3471 = vmatpush.bf16.msrb.mxu3 %v5525_v62  ;;  %v2146_v16 = vpop.f32.mrf.mxu2  ;;  %v2159_v26 = vpop.f32.mrf.mxu3  ;;  %v5556_v59 = vld [vmem:[%s7901_s5 + $0x2d8] sm:$0xff]  ;;  %v599_v62 = vperm.slane %v7703_v48, 2  ;;  %v2132_v20 = vadd.f32 %v7578_v56, %v2119_v13  ;;  %v5529_v56 = vld [vmem:[%s7901_s5 + $0x200] sm:$0xff]  ;;  %v5570_v13 = vld [vmem:[%s7901_s5 + $0x348] sm:$0xff] }
 0x219   : > { %v2325_v4 = vmax.f32 %v2132_v20, 0.0  ;;  %v5569_v20 = vld [vmem:[%s7901_s5 + $0x340] sm:$0xff] }
 0x21a   : > { %3433 = vmatpush.bf16.msrb.mxu0 %v5500_v63  ;;  %3446 = vmatpush.bf16.msrb.mxu1 %v5508_v2  ;;  %v600_v63 = vperm.slane %v7703_v48, 3 }
 0x21b   : > { %3459 = vmatpush.bf16.msrb.mxu2 %v5516_v3  ;;  %3472 = vmatpush.bf16.msrb.mxu3 %v5524_v50 }
 0x21e   : > { %3434 = vmatpush.bf16.msrb.mxu0 %v5499_v14  ;;  %3447 = vmatpush.bf16.msrb.mxu1 %v5507_v15  ;;  %v2145_v14 = vadd.f32 %v7604_v7, %v598_v57  ;;  %v5547_v15 = vld [vmem:[%s7901_s5 + $0x290] sm:$0xff]  ;;  %v5538_v7 = vld [vmem:[%s7901_s5 + $0x248] sm:$0xff] }
 0x21f   : > { %3460 = vmatpush.bf16.msrb.mxu2 %v5515_v18  ;;  %3473 = vmatpush.bf16.msrb.mxu3 %v5523_v12  ;;  %v5555_v18 = vld [vmem:[%s7901_s5 + $0x2d0] sm:$0xff] }
 0x222   : > { %3435 = vmatpush.bf16.msrb.mxu0 %v5498_v21  ;;  %3448 = vmatpush.bf16.msrb.mxu1 %v5506_v23  ;;  %v2158_v21 = vadd.f32 %v7606_v8, %v2145_v14  ;;  %v5546_v23 = vld [vmem:[%s7901_s5 + $0x288] sm:$0xff]  ;;  %v5537_v8 = vld [vmem:[%s7901_s5 + $0x240] sm:$0xff] }
 0x223   : > { %3461 = vmatpush.bf16.msrb.mxu2 %v5514_v24  ;;  %3474 = vmatpush.bf16.msrb.mxu3 %v5522_v51  ;;  %v5554_v24 = vld [vmem:[%s7901_s5 + $0x2c8] sm:$0xff] }
 0x226   : > { %3436 = vmatpush.bf16.msrb.mxu0 %v5497_v28  ;;  %3449 = vmatpush.bf16.msrb.mxu1 %v5505_v29  ;;  %v2170_v44 = vpop.f32.mrf.mxu0  ;;  %v2183_v34 = vpop.f32.mrf.mxu1  ;;  %v2326_v28 = vmax.f32 %v2158_v21, 0.0  ;;  %v5545_v29 = vld [vmem:[%s7901_s5 + $0x280] sm:$0xff] }
 0x227   : > { %3462 = vmatpush.bf16.msrb.mxu2 %v5513_v60  ;;  %3475 = vmatpush.bf16.msrb.mxu3 %v5521_v6  ;;  %v2171_v12 = vadd.f32 %v2170_v44, %v599_v62  ;;  %v5553_v60 = vld [vmem:[%s7901_s5 + $0x2c0] sm:$0xff]  ;;  %v5588_v62 = vld [vmem:[%s7901_s5 + $0x3d8] sm:$0xff] }
 0x228   : > { %v2342_v33 = vpack.c.bf16 %v2326_v28, %v2326_v28  ;;  %v5573_v44 = vld [vmem:[%s7901_s5 + $0x360] sm:$0xff] }
 0x229   : > { %3437 = vmatmul.bf16.vlgmr.msrb.gmra.mxu0 %v2337_v25  ;;  %3450 = vmatmul.bf16.vlgmr.msrb.gmra.mxu1 %v2338_v61  ;;  %v2184_v51 = vadd.f32 %v2183_v34, %v2171_v12  ;;  %v5567_v61 = vld [vmem:[%s7901_s5 + $0x330] sm:$0xff]  ;;  %v5581_v34 = vld [vmem:[%s7901_s5 + $0x3a0] sm:$0xff] }
 0x22a   : > { %3481 = vmatpush.bf16.msra.mxu0 %v5536_v31  ;;  %3494 = vmatpush.bf16.msra.mxu1 %v5544_v32  ;;  %v5576_v31 = vld [vmem:[%s7901_s5 + $0x378] sm:$0xff]  ;;  %v2341_v32 = vpack.c.bf16 %v2325_v4, %v2325_v4 }
 0x22b   : > { %3507 = vmatpush.bf16.msra.mxu2 %v5552_v36  ;;  %3520 = vmatpush.bf16.msra.mxu3 %v5560_v55  ;;  %v2327_v6 = vmax.f32 %v2184_v51, 0.0  ;;  %v5592_v36 = vld [vmem:[%s7901_s5 + $0x3f8] sm:$0xff]  ;;  %v5585_v51 = vld [vmem:[%s7901_s5 + $0x3c0] sm:$0xff] }
 0x22c   : > { %3463 = vmatmul.bf16.vlgmr.msrb.gmra.mxu2 %v2339_v0  ;;  %3476 = vmatmul.bf16.vlgmr.msrb.gmra.mxu3 %v2340_v1  ;;  %v5591_v0 = vld [vmem:[%s7901_s5 + $0x3f0] sm:$0xff]  ;;  %v5566_v1 = vld [vmem:[%s7901_s5 + $0x328] sm:$0xff] }
 0x22d   : > { %v2343_v55 = vpack.c.bf16 %v2327_v6, %v2327_v6 }
 0x22e   : > { %3482 = vmatpush.bf16.msra.mxu0 %v5535_v37  ;;  %3495 = vmatpush.bf16.msra.mxu1 %v5543_v38  ;;  %v2172_v50 = vpop.f32.mrf.mxu0  ;;  %v2185_v9 = vpop.f32.mrf.mxu1  ;;  %v5575_v37 = vld [vmem:[%s7901_s5 + $0x370] sm:$0xff] }
 0x22f   : > { %3508 = vmatpush.bf16.msra.mxu2 %v5551_v39  ;;  %3521 = vmatpush.bf16.msra.mxu3 %v5559_v41  ;;  %v2196_v2 = vpop.f32.mrf.mxu2  ;;  %v2209_v3 = vpop.f32.mrf.mxu3  ;;  %v5583_v38 = vld [vmem:[%s7901_s5 + $0x3b0] sm:$0xff]  ;;  %v5574_v39 = vld [vmem:[%s7901_s5 + $0x368] sm:$0xff] }
 0x230   : > { %v2197_v19 = vadd.f32 %v2196_v2, %v600_v63  ;;  %v5563_v63 = vld [vmem:[%s7901_s5 + $0x310] sm:$0xff] }
 0x231   : > { %v5571_v2 = vld [vmem:[%s7901_s5 + $0x350] sm:$0xff] }
 0x232   : > { %3483 = vmatpush.bf16.msra.mxu0 %v5534_v42  ;;  %3496 = vmatpush.bf16.msra.mxu1 %v5542_v40  ;;  %v2210_v16 = vadd.f32 %v2209_v3, %v2197_v19  ;;  %v5582_v40 = vld [vmem:[%s7901_s5 + $0x3a8] sm:$0xff]  ;;  %v5579_v9 = vld [vmem:[%s7901_s5 + $0x390] sm:$0xff] }
 0x233   : > { %3509 = vmatpush.bf16.msra.mxu2 %v5550_v5  ;;  %3522 = vmatpush.bf16.msra.mxu3 %v5558_v43  ;;  %v5590_v5 = vld [vmem:[%s7901_s5 + $0x3e8] sm:$0xff]  ;;  %v5565_v43 = vld [vmem:[%s7901_s5 + $0x320] sm:$0xff] }
 0x234   : > { %v2328_v17 = vmax.f32 %v2210_v16, 0.0  ;;  %v5578_v19 = vld [vmem:[%s7901_s5 + $0x388] sm:$0xff] }
 0x236   : > { %3484 = vmatpush.bf16.msra.mxu0 %v5533_v35  ;;  %3497 = vmatpush.bf16.msra.mxu1 %v5541_v45  ;;  %v2344_v25 = vpack.c.bf16 %v2328_v17, %v2328_v17  ;;  %v5589_v35 = vld [vmem:[%s7901_s5 + $0x3e0] sm:$0xff]  ;;  %v5564_v45 = vld [vmem:[%s7901_s5 + $0x318] sm:$0xff] }
 0x237   : > { %3510 = vmatpush.bf16.msra.mxu2 %v5549_v46  ;;  %3523 = vmatpush.bf16.msra.mxu3 %v5557_v47  ;;  %v2198_v26 = vpop.f32.mrf.mxu2  ;;  %v2211_v27 = vpop.f32.mrf.mxu3  ;;  %v5572_v46 = vld [vmem:[%s7901_s5 + $0x358] sm:$0xff]  ;;  %v601_v47 = vperm.slane %v7703_v48, 4 }
 0x238   : > { %v603_v27 = vperm.slane %v7703_v48, 6 }
 0x23a   : > { %3485 = vmatpush.bf16.msra.mxu0 %v5532_v49  ;;  %3498 = vmatpush.bf16.msra.mxu1 %v5540_v52  ;;  %v602_v49 = vperm.slane %v7703_v48, 5 }
 0x23b   : > { %3511 = vmatpush.bf16.msra.mxu2 %v5548_v58  ;;  %3524 = vmatpush.bf16.msra.mxu3 %v5556_v59  ;;  %v5580_v59 = vld [vmem:[%s7901_s5 + $0x398] sm:$0xff] }
 0x23e   : > { %3486 = vmatpush.bf16.msra.mxu0 %v5531_v10  ;;  %3499 = vmatpush.bf16.msra.mxu1 %v5539_v11  ;;  %v5587_v10 = vld [vmem:[%s7901_s5 + $0x3d0] sm:$0xff]  ;;  %v5562_v11 = vld [vmem:[%s7901_s5 + $0x308] sm:$0xff] }
 0x23f   : > { %3512 = vmatpush.bf16.msra.mxu2 %v5547_v15  ;;  %3525 = vmatpush.bf16.msra.mxu3 %v5555_v18 }
 0x242   : > { %3487 = vmatpush.bf16.msra.mxu0 %v5530_v54  ;;  %3500 = vmatpush.bf16.msra.mxu1 %v5538_v7  ;;  %v5586_v54 = vld [vmem:[%s7901_s5 + $0x3c8] sm:$0xff]  ;;  %v5561_v7 = vld [vmem:[%s7901_s5 + $0x300] sm:$0xff] }
 0x243   : > { %3513 = vmatpush.bf16.msra.mxu2 %v5546_v23  ;;  %3526 = vmatpush.bf16.msra.mxu3 %v5554_v24  ;;  %v5577_v24 = vld [vmem:[%s7901_s5 + $0x380] sm:$0xff] }
 0x246   : > { %3488 = vmatpush.bf16.msra.mxu0 %v5529_v56  ;;  %3501 = vmatpush.bf16.msra.mxu1 %v5537_v8  ;;  %v2222_v41 = vpop.f32.mrf.mxu0  ;;  %v2235_v42 = vpop.f32.mrf.mxu1 }
 0x247   : > { %3514 = vmatpush.bf16.msra.mxu2 %v5545_v29  ;;  %3527 = vmatpush.bf16.msra.mxu3 %v5553_v60  ;;  %v2223_v3 = vadd.f32 %v2222_v41, %v601_v47  ;;  %v604_v29 = vperm.slane %v7703_v48, 7 }
 0x249   : > { %3489 = vmatmul.bf16.vlgmr.msra.gmra.mxu0 %v2341_v32  ;;  %3502 = vmatmul.bf16.vlgmr.msra.gmra.mxu1 %v2342_v33  ;;  %v2236_v14 = vadd.f32 %v2235_v42, %v2223_v3 }
 0x24a   : > { %3533 = vmatpush.bf16.msrb.mxu0 %v5568_v30  ;;  %3546 = vmatpush.bf16.msrb.mxu1 %v5576_v31 }
 0x24b   : > { %3515 = vmatmul.bf16.vlgmr.msra.gmra.mxu2 %v2343_v55  ;;  %3528 = vmatmul.bf16.vlgmr.msra.gmra.mxu3 %v2344_v25  ;;  %v2329_v21 = vmax.f32 %v2236_v14, 0.0 }
 0x24c   : > { %3559 = vmatpush.bf16.msrb.mxu2 %v5584_v22  ;;  %3572 = vmatpush.bf16.msrb.mxu3 %v5592_v36 }
 0x24d   : > { %v2345_v16 = vpack.c.bf16 %v2329_v21, %v2329_v21 }
 0x24e   : > { %3534 = vmatpush.bf16.msrb.mxu0 %v5567_v61  ;;  %3547 = vmatpush.bf16.msrb.mxu1 %v5575_v37  ;;  %v2224_v57 = vpop.f32.mrf.mxu0  ;;  %v2237_v58 = vpop.f32.mrf.mxu1  ;;  %v5633_v37 = vld [vmem:[%s7902_s6] ss:$0 sm:$0xff] }
 0x24f   : > { %v2248_v52 = vpop.f32.mrf.mxu2  ;;  %v2261_v53 = vpop.f32.mrf.mxu3 }
 0x250   : > { %3560 = vmatpush.bf16.msrb.mxu2 %v5583_v38  ;;  %3573 = vmatpush.bf16.msrb.mxu3 %v5591_v0  ;;  %v2249_v50 = vadd.f32 %v2248_v52, %v602_v49 }
 0x252   : > { %3535 = vmatpush.bf16.msrb.mxu0 %v5566_v1  ;;  %3548 = vmatpush.bf16.msrb.mxu1 %v5574_v39  ;;  %v2262_v15 = vadd.f32 %v2261_v53, %v2249_v50 }
 0x254   : > { %3561 = vmatpush.bf16.msrb.mxu2 %v5582_v40  ;;  %3574 = vmatpush.bf16.msrb.mxu3 %v5590_v5  ;;  %v2330_v23 = vmax.f32 %v2262_v15, 0.0 }
 0x256   : > { %3536 = vmatpush.bf16.msrb.mxu0 %v5565_v43  ;;  %3549 = vmatpush.bf16.msrb.mxu1 %v5573_v44  ;;  %v2346_v26 = vpack.c.bf16 %v2330_v23, %v2330_v23 }
 0x257   : > { %v2250_v18 = vpop.f32.mrf.mxu2  ;;  %v2263_v12 = vpop.f32.mrf.mxu3 }
 0x258   : > { %3562 = vmatpush.bf16.msrb.mxu2 %v5581_v34  ;;  %3575 = vmatpush.bf16.msrb.mxu3 %v5589_v35 }
 0x25a   : > { %3537 = vmatpush.bf16.msrb.mxu0 %v5564_v45  ;;  %3550 = vmatpush.bf16.msrb.mxu1 %v5572_v46 }
 0x25c   : > { %3563 = vmatpush.bf16.msrb.mxu2 %v5580_v59  ;;  %3576 = vmatpush.bf16.msrb.mxu3 %v5588_v62 }
 0x25e   : > { %3538 = vmatpush.bf16.msrb.mxu0 %v5563_v63  ;;  %3551 = vmatpush.bf16.msrb.mxu1 %v5571_v2 }
 0x260   : > { %3564 = vmatpush.bf16.msrb.mxu2 %v5579_v9  ;;  %3577 = vmatpush.bf16.msrb.mxu3 %v5587_v10 }
 0x262   : > { %3539 = vmatpush.bf16.msrb.mxu0 %v5562_v11  ;;  %3552 = vmatpush.bf16.msrb.mxu1 %v5570_v13 }
 0x264   : > { %3565 = vmatpush.bf16.msrb.mxu2 %v5578_v19  ;;  %3578 = vmatpush.bf16.msrb.mxu3 %v5586_v54 }
 0x266   : > { %3540 = vmatpush.bf16.msrb.mxu0 %v5561_v7  ;;  %3553 = vmatpush.bf16.msrb.mxu1 %v5569_v20  ;;  %v2274_v56 = vpop.f32.mrf.mxu0  ;;  %v2287_v8 = vpop.f32.mrf.mxu1 }
 0x267   : > { %v2275_v4 = vadd.f32 %v2274_v56, %v603_v27 }
 0x268   : > { %3566 = vmatpush.bf16.msrb.mxu2 %v5577_v24  ;;  %3579 = vmatpush.bf16.msrb.mxu3 %v5585_v51 }
 0x269   : > { %3541 = vmatmul.bf16.vlgmr.msrb.gmra.mxu0 %v2345_v16  ;;  %3554 = vmatmul.bf16.vlgmr.msrb.gmra.mxu1 %v2346_v26  ;;  %v2288_v28 = vadd.f32 %v2287_v8, %v2275_v4 }
 0x26b   : > { %v2331_v60 = vmax.f32 %v2288_v28, 0.0 }
 0x26d   : > { %v2347_v6 = vpack.c.bf16 %v2331_v60, %v2331_v60 }
 0x26e   : > { %v2276_v32 = vpop.f32.mrf.mxu0  ;;  %v2289_v33 = vpop.f32.mrf.mxu1 }
 0x26f   : > { %v2300_v17 = vpop.f32.mrf.mxu2  ;;  %v2313_v30 = vpop.f32.mrf.mxu3  ;;  %3567 = vmatmul.bf16.vlgmr.msrb.gmra.mxu2 %v2347_v6 }
 0x270   : > { %v2301_v31 = vadd.f32 %v2300_v17, %v604_v29 }
 0x272   : > { %v2314_v22 = vadd.f32 %v2313_v30, %v2301_v31 }
 0x274   : > { %v2332_v36 = vmax.f32 %v2314_v22, 0.0 }
 0x276   : > { %v2348_v55 = vpack.c.bf16 %v2332_v36, %v2332_v36 }
 0x277   : > { %v2302_v25 = vpop.f32.mrf.mxu2  ;;  %v2315_v61 = vpop.f32.mrf.mxu3 }
 0x278   : > { %3580 = vmatmul.bf16.vlgmr.msrb.gmra.mxu3 %v2348_v55 }
 0x286   : > { %v3386_v38 = vpop.f32.mrf.mxu0  ;;  %v3399_v48 = vpop.f32.mrf.mxu1 }
 0x287   : > { %v3387_v0 = vadd.f32 %v5633_v37, %v3386_v38 }
 0x289   : > { %v3400_v1 = vadd.f32 %v3399_v48, %v3387_v0 }
 0x28e   : > { %v3388_v40 = vpop.f32.mrf.mxu0  ;;  %v3401_v5 = vpop.f32.mrf.mxu1 }
 0x28f   : > { %v3412_v39 = vpop.f32.mrf.mxu2  ;;  %v3425_v41 = vpop.f32.mrf.mxu3 }
 0x290   : > { %v3413_v42 = vadd.f32 %v3412_v39, %v3400_v1 }
 0x292   : > { %v3426_v43 = vadd.f32 %v3425_v41, %v3413_v42 }
 0x297   : > { %v3414_v44 = vpop.f32.mrf.mxu2  ;;  %v3427_v34 = vpop.f32.mrf.mxu3 }
 0x2a6   : > { %v3438_v35 = vpop.f32.mrf.mxu0  ;;  %v3451_v45 = vpop.f32.mrf.mxu1 }
 0x2a7   : > { %v3439_v46 = vadd.f32 %v3438_v35, %v3426_v43 }
 0x2a9   : > { %v3452_v47 = vadd.f32 %v3451_v45, %v3439_v46 }
 0x2ae   : > { %v3440_v57 = vpop.f32.mrf.mxu0  ;;  %v3453_v58 = vpop.f32.mrf.mxu1 }
 0x2af   : > { %v3464_v49 = vpop.f32.mrf.mxu2  ;;  %v3477_v52 = vpop.f32.mrf.mxu3 }
 0x2b0   : > { %v3465_v53 = vadd.f32 %v3464_v49, %v3452_v47 }
 0x2b2   : > { %v3478_v59 = vadd.f32 %v3477_v52, %v3465_v53 }
 0x2b7   : > { %v3466_v62 = vpop.f32.mrf.mxu2  ;;  %v3479_v63 = vpop.f32.mrf.mxu3 }
 0x2c6   : > { %v3490_v2 = vpop.f32.mrf.mxu0  ;;  %v3503_v3 = vpop.f32.mrf.mxu1 }
 0x2c7   : > { %v3491_v54 = vadd.f32 %v3490_v2, %v3478_v59 }
 0x2c9   : > { %v3504_v7 = vadd.f32 %v3503_v3, %v3491_v54 }
 0x2ce   : > { %v3516_v50 = vpop.f32.mrf.mxu2  ;;  %v3529_v9 = vpop.f32.mrf.mxu3 }
 0x2cf   : > { %v3492_v10 = vpop.f32.mrf.mxu0  ;;  %v3505_v11 = vpop.f32.mrf.mxu1  ;;  %v3517_v20 = vadd.f32 %v3516_v50, %v3504_v7 }
 0x2d1   : > { %v3530_v21 = vadd.f32 %v3529_v9, %v3517_v20 }
 0x2d6   : > { %v3518_v13 = vpop.f32.mrf.mxu2  ;;  %v3531_v14 = vpop.f32.mrf.mxu3 }
 0x2e6   : > { %v3542_v15 = vpop.f32.mrf.mxu0  ;;  %v3555_v18 = vpop.f32.mrf.mxu1 }
 0x2e7   : > { %v3543_v23 = vadd.f32 %v3542_v15, %v3530_v21 }
 0x2e9   : > { %v3556_v51 = vadd.f32 %v3555_v18, %v3543_v23 }
 0x2ee   : > { %v3544_v12 = vpop.f32.mrf.mxu0  ;;  %v3557_v19 = vpop.f32.mrf.mxu1 }
 0x2f2   : > { %v3568_v24 = vpop.f32.mrf.mxu2 }
 0x2f3   : > { %v3569_v16 = vadd.f32 %v3568_v24, %v3556_v51 }
 0x2fa   : > { %v3570_v56 = vpop.f32.mrf.mxu2 }
 0x2fb   : > { %v3581_v26 = vpop.f32.mrf.mxu3 }
 0x2fc   : > { %v3582_v27 = vadd.f32 %v3581_v26, %v3569_v16 }
 0x2fe   : > { %3585 = vst [vmem:[%s271_s9] sm:$0xff] %v3582_v27 }
 0x2ff   : > { %5665 = shalt.err (!%p5662_p3)
}
 0x300   : > { %5593 = dma.vmem_to_hbm [thread:$0]  (%p5781_p5), %s3600_s13, 128, %s3602_s14, %s3587_s28  }
 0x303   : > { %v3583_v8 = vpop.f32.mrf.mxu3 }
 0x304 PF: > { %p5599_p4 = scmp.ge.s32.totalorder %s5700_s27, 2  ;;  %s3613_s20 = sand.u32 1, %s5688_s24  }
 0x305   : > { %s3614_s23 = scalar_lea.sflag [#allocation3], %s3613_s20 }
 0x306   : > { %p5596_p7 = pnand %p5599_p4, %p5785_p6 }
 0x308   : > { %p5597_p8 = pneg %p5596_p7 }
 0x30a   : > { %5683 = dma.done.wait (%p5597_p8), %s3614_s23, 128  }
 0x30b   : > { %5685 = vsyncadd (%p5597_p8), %s3614_s23, 4294967168  ;;  %p17_p9 = scmp.ge.s32.totalorder %s5768_s30, 4   ;;  %s7906_s24 = smov %s5692_s25 }
 0x30c   : > { %s7907_s25 = smov %s5696_s26  ;;  %s7908_s26 = smov %s5779_s10 }
 0x30d   : > { %s7909_s27 = smov %s5768_s30  ;;  %19 = sbr.rel (!%p17_p9) target bundleno = 3 (0x3), region = 83 }
 0x312   :  { %3620 = vsyncpa [#allocation3], 1 }
 0x313   :  { %3622 = vsyncpa [#allocation3 + $0x1], 1 }

</bundles_post_ra>
